<compile_context>
chip_gen: v5e
topology: v5e:2x2
jax: 0.10.0
libtpu: 0.0.40
codegen_flags: <defaults>
</compile_context>

<pallas_src>
import functools
import math

import jax
import jax.numpy as jnp
from jax.experimental import pallas as pl
from jax.experimental.pallas import tpu as pltpu

ALPHA_RELU = 0.15
IN_EPS = 1e-5
MAX_TP = 1024                    # rows of flattened P per grid step
VMEM_LIMIT = 32 * 1024 * 1024    # explicit scoped-VMEM cap (fits v5e/v6e/v7x)


# ----------------------------- Pallas kernels ------------------------------ #

def _conv_block_kernel(*refs, cout, alpha, with_extra):
    """No-norm block: conv(+bias) -> LeakyReLU, + 1x1 skip(+bias); optionally
    appends an extra channel block (age feature map) so the concat never
    becomes a standalone XLA op.

    taps:  (1, TP, KC)      bf16  packed taps, center tap in the first Cin cols
    extra: (1, TP, A)       bf16  [only if with_extra]
    wcat:  (KC, 2*cout)     bf16  [main conv | zero-padded 1x1 skip] weights
    bcat:  (1, 2*cout)      f32   [conv bias | skip bias]
    out:   (1, TP, cout+A)  bf16
    """
    if with_extra:
        taps_ref, extra_ref, wcat_ref, bcat_ref, o_ref = refs
    else:
        taps_ref, wcat_ref, bcat_ref, o_ref = refs
    t = taps_ref[0]
    # One weight-stationary MXU pass for main + skip (N = 2*cout).
    z = jnp.dot(t, wcat_ref[...], preferred_element_type=jnp.float32)
    z = z + bcat_ref[...]
    y = z[:, :cout]
    skip = z[:, cout:]
    y = jnp.where(y > 0, y, alpha * y) + skip
    y = y.astype(o_ref.dtype)
    if with_extra:
        y = jnp.concatenate([y, extra_ref[0]], axis=-1)
    o_ref[0] = y


def _fused_norm_block_kernel(taps_ref, w_ref, ws_ref, bs_ref, o_ref,
                             y_ref, stats_ref, *, cin, n, n_chunks, alpha, eps):
    """Norm block, fully fused: conv -> InstanceNorm -> LeakyReLU -> + 1x1 skip.

    Grid is (B, nP) with the P axis "arbitrary".  Per step: conv the tap tile
    (f32 MXU accumulation), fold per-channel sum / sum-of-squares into a small
    VMEM accumulator, stash the f32 pre-norm output in VMEM scratch and the
    f32->bf16 skip branch in the resident (1, P, Cout) output block.  On the
    last step, finalize mean/var, normalize, LeakyReLU, add skip, write out.

    taps:  (1, TP, KC) bf16   w: (KC, Cout) bf16   ws: (Cin, Cout) bf16
    bs:    (1, Cout)   f32    out: (1, P, Cout) bf16 (resident across P steps)
    y_ref: (P, Cout)   f32 scratch   stats_ref: (2, Cout) f32 scratch
    """
    p = pl.program_id(1)
    tp = taps_ref.shape[1]

    @pl.when(p == 0)
    def _():
        stats_ref[...] = jnp.zeros_like(stats_ref)

    t = taps_ref[0]                                            # (TP, KC) bf16
    y = jnp.dot(t, w_ref[...], preferred_element_type=jnp.float32)
    stats_ref[...] += jnp.concatenate(
        [jnp.sum(y, axis=0, keepdims=True),
         jnp.sum(y * y, axis=0, keepdims=True)], axis=0)
    # 1x1 skip from the center tap (first cin columns of the packed taps);
    # conv bias is dropped: it cancels under InstanceNorm.
    skip = jnp.dot(t[:, :cin], ws_ref[...],
                   preferred_element_type=jnp.float32) + bs_ref[...]

    if n_chunks == 1:
        y_ref[...] = y
        o_ref[0] = skip.astype(o_ref.dtype)
    else:
        row = pl.multiple_of(p * tp, 8)    # tp is a multiple of 8 when nP > 1
        y_ref[pl.ds(row, tp), :] = y
        o_ref[0, pl.ds(row, tp), :] = skip.astype(o_ref.dtype)

    @pl.when(p == pl.num_programs(1) - 1)
    def _():
        st = stats_ref[...]
        inv_n = 1.0 / n
        mean = st[0:1, :] * inv_n
        var = st[1:2, :] * inv_n - mean * mean
        inv = jax.lax.rsqrt(jnp.maximum(var, 0.0) + eps)
        for i in range(n_chunks):          # static, small; bounds VMEM temps
            lo, hi = i * tp, (i + 1) * tp
            yv = (y_ref[lo:hi, :] - mean) * inv
            yv = jnp.where(yv > 0, yv, alpha * yv)
            sk = o_ref[0, lo:hi, :].astype(jnp.float32)
            o_ref[0, lo:hi, :] = (yv + sk).astype(o_ref.dtype)


def _linear_kernel(x_ref, w_ref, b_ref, o_ref, *, alpha):
    """Linear(+bias) -> LeakyReLU in one step.

    x: (B, Fr, 128) bf16, w: (O, Fr, 128) bf16, b: (1, O) f32, out: (B, O) f32.
    The feature axis is pre-reshaped to (Fr, 128) so the reduce runs across
    full sublane/lane tiles instead of 1-2 live sublanes.
    """
    x = x_ref[...].astype(jnp.float32)
    nout = w_ref.shape[0]
    cols = []
    for o in range(nout):                       # output_dim is tiny (1)
        w = w_ref[o].astype(jnp.float32)        # (Fr, 128)
        s = jnp.sum(x * w[None, :, :], axis=1)  # (B, 128)
        cols.append(jnp.sum(s, axis=-1, keepdims=True))
    y = cols[0] if nout == 1 else jnp.concatenate(cols, axis=-1)
    y = y + b_ref[...]
    o_ref[...] = jnp.where(y > 0, y, alpha * y).astype(o_ref.dtype)


# ----------------------------- wrappers (glue) ------------------------------ #

def _tap_order(k):
    c = (k // 2) * k + (k // 2)
    return [c] + [t for t in range(k * k) if t != c]


def _pick_tile(p, max_tp):
    if p <= max_tp:
        return p
    tp = max_tp
    while tp >= 8:
        if p % tp == 0:
            return tp
        tp //= 2
    return p


def _pack_taps(x_nhwc, k, stride, pad):
    """im2col taps packed lane-dense, center tap first.  Pure data-movement
    glue (XLA); the kernels read the result exactly once."""
    B, H, W, C = x_nhwc.shape
    ho = (H + 2 * pad - k) // stride + 1
    wo = (W + 2 * pad - k) // stride + 1
    xp = jnp.pad(x_nhwc, ((0, 0), (pad, pad), (pad, pad), (0, 0)))
    slices = []
    for t in _tap_order(k):
        kh, kw = t // k, t % k
        slices.append(xp[:, kh:kh + stride * (ho - 1) + 1:stride,
                          kw:kw + stride * (wo - 1) + 1:stride, :])
    taps = jnp.concatenate(slices, axis=-1).reshape(B, ho * wo, k * k * C)
    return taps, ho, wo


def conv_res_block(x_nhwc, blk, *, alpha=ALPHA_RELU, extra_nhwc=None):
    k, stride, pad = blk["k"], blk["stride"], blk["pad"]
    cin, cout = blk["cin"], blk["cout"]
    B = x_nhwc.shape[0]

    taps, ho, wo = _pack_taps(x_nhwc.astype(jnp.bfloat16), k, stride, pad)
    P = ho * wo
    KC = k * k * cin
    TP = _pick_tile(P, MAX_TP)
    nP = P // TP

    if not blk["use_norm"]:
        in_specs = [pl.BlockSpec((1, TP, KC), lambda b_, p_: (b_, p_, 0))]
        operands = [taps]
        a = 0
        if extra_nhwc is not None:
            a = extra_nhwc.shape[-1]
            extra = extra_nhwc.astype(jnp.bfloat16).reshape(B, P, a)
            in_specs.append(pl.BlockSpec((1, TP, a), lambda b_, p_: (b_, p_, 0)))
            operands.append(extra)
        in_specs += [pl.BlockSpec((KC, 2 * cout), lambda b_, p_: (0, 0)),
                     pl.BlockSpec((1, 2 * cout), lambda b_, p_: (0, 0))]
        operands += [blk["wcat"], blk["bcat"]]
        out = pl.pallas_call(
            functools.partial(_conv_block_kernel, cout=cout, alpha=alpha,
                              with_extra=extra_nhwc is not None),
            out_shape=jax.ShapeDtypeStruct((B, P, cout + a), jnp.bfloat16),
            grid=(B, nP),
            in_specs=in_specs,
            out_specs=pl.BlockSpec((1, TP, cout + a), lambda b_, p_: (b_, p_, 0)),
            compiler_params=pltpu.CompilerParams(
                dimension_semantics=("parallel", "parallel"),
                vmem_limit_bytes=VMEM_LIMIT),
        )(*operands)
        return out.reshape(B, ho, wo, cout + a)

    assert extra_nhwc is None
    out = pl.pallas_call(
        functools.partial(_fused_norm_block_kernel, cin=cin, n=float(P),
                          n_chunks=nP, alpha=alpha, eps=IN_EPS),
        out_shape=jax.ShapeDtypeStruct((B, P, cout), jnp.bfloat16),
        grid=(B, nP),
        in_specs=[
            pl.BlockSpec((1, TP, KC), lambda b_, p_: (b_, p_, 0)),
            pl.BlockSpec((KC, cout), lambda b_, p_: (0, 0)),
            pl.BlockSpec((cin, cout), lambda b_, p_: (0, 0)),
            pl.BlockSpec((1, cout), lambda b_, p_: (0, 0)),
        ],
        out_specs=pl.BlockSpec((1, P, cout), lambda b_, p_: (b_, 0, 0)),
        scratch_shapes=[pltpu.VMEM((P, cout), jnp.float32),
                        pltpu.VMEM((2, cout), jnp.float32)],
        compiler_params=pltpu.CompilerParams(
            dimension_semantics=("parallel", "arbitrary"),
            vmem_limit_bytes=VMEM_LIMIT),
    )(taps, blk["w"], blk["ws"], blk["bs"])
    return out.reshape(B, ho, wo, cout)


def linear_layer(x3, w3, b2, *, alpha=ALPHA_RELU):
    B, Fr, L = x3.shape
    O = w3.shape[0]
    return pl.pallas_call(
        functools.partial(_linear_kernel, alpha=alpha),
        out_shape=jax.ShapeDtypeStruct((B, O), jnp.float32),
        grid=(1,),
        in_specs=[pl.BlockSpec((B, Fr, L), lambda i: (0, 0, 0)),
                  pl.BlockSpec((O, Fr, L), lambda i: (0, 0, 0)),
                  pl.BlockSpec((1, O), lambda i: (0, 0))],
        out_specs=pl.BlockSpec((B, O), lambda i: (0, 0)),
        compiler_params=pltpu.CompilerParams(
            dimension_semantics=("arbitrary",)),
    )(x3, w3, b2)


# ------------------------------ model (params) ------------------------------ #

def init_conv_res_block(key, cin, cout, k=3):
    k1, k2, k3, k4 = jax.random.split(key, 4)
    s_main = 1.0 / math.sqrt(cin * k * k)
    s_skip = 1.0 / math.sqrt(cin)
    return dict(
        w=jax.random.normal(k1, (k, k, cin, cout), jnp.float32) * s_main,
        b=jax.random.normal(k2, (cout,), jnp.float32) * s_main,
        ws=jax.random.normal(k3, (cin, cout), jnp.float32) * s_skip,
        bs=jax.random.normal(k4, (cout,), jnp.float32) * s_skip,
    )


def _prepack_block(raw, *, stride, use_norm, k, pad):
    """All weight preprocessing hoisted here (one-time, at init)."""
    cin, cout = raw["w"].shape[2], raw["w"].shape[3]
    kc = k * k * cin
    order = _tap_order(k)
    w9 = raw["w"].reshape(k * k, cin, cout)
    wp = jnp.take(w9, jnp.array(order), axis=0).reshape(kc, cout)
    wp = wp.astype(jnp.bfloat16)
    blk = dict(stride=stride, use_norm=use_norm, k=k, pad=pad,
               cin=cin, cout=cout)
    if use_norm:
        # conv bias dropped: a per-channel constant cancels under InstanceNorm.
        blk["w"] = wp
        blk["ws"] = raw["ws"].astype(jnp.bfloat16)
        blk["bs"] = raw["bs"].reshape(1, cout).astype(jnp.float32)
    else:
        # Skip weights zero-padded to the full packed-K so the same taps
        # operand feeds one fused [main | skip] matmul.
        ws_full = jnp.zeros((kc, cout), jnp.float32).at[:cin].set(raw["ws"])
        blk["wcat"] = jnp.concatenate([wp, ws_full.astype(jnp.bfloat16)],
                                      axis=1)
        blk["bcat"] = jnp.concatenate(
            [raw["b"].reshape(1, cout), raw["bs"].reshape(1, cout)],
            axis=1).astype(jnp.float32)
    return blk


class IDFGANDiscriminatorPallas:
    """Mirrors IDFGANDiscriminator.__init__ channel bookkeeping exactly."""

    def __init__(self, key, norm_type="in2d", alpha_relu=0.15, min_features=32,
                 max_features=512, n_inputs=3, n_output=64, output_dim=1,
                 n_ages_classes=5, down_steps=4, kernel_size=3, in_size=128):
        clip = lambda v: max(min_features, min(v, max_features))
        self.in_size = in_size
        self.alpha = alpha_relu
        self.k = kernel_size
        pad = kernel_size // 2

        keys = jax.random.split(key, down_steps + 1)
        # input layer: scale='none', stride=1, norm_type='none'
        blocks = [_prepack_block(
            init_conv_res_block(keys[0], n_inputs, n_output, kernel_size),
            stride=1, use_norm=False, k=kernel_size, pad=pad)]

        n_output = n_output + n_ages_classes
        n_in = n_output
        for i in range(down_steps - 1):
            if i == 0:
                n_in = n_output
                n_output = clip((n_output - n_ages_classes) * 2)
            blocks.append(_prepack_block(
                init_conv_res_block(keys[i + 1], n_in, n_output, kernel_size),
                stride=2, use_norm=(norm_type != "none"),
                k=kernel_size, pad=pad))
            if i != down_steps - 1:
                if i == 0:
                    n_in = clip((n_in - n_ages_classes) * 2)
                else:
                    n_in = clip(n_in * 2)
                n_output = clip(n_output * 2)
        self.blocks = blocks

        # ---- final Linear: weights permuted once to NHWC flatten order ----
        img_after = in_size // 2 ** (down_steps - 1)
        c_last = n_output
        fin = c_last * img_after * img_after
        kl1, kl2 = jax.random.split(keys[-1])
        s = 1.0 / math.sqrt(fin)
        lw = jax.random.normal(kl1, (fin, output_dim), jnp.float32) * s
        lb = jax.random.normal(kl2, (output_dim,), jnp.float32) * s
        # nn.Flatten on NCHW flattens (C, H, W); the kernels keep NHWC, so
        # permute the weight rows once instead of transposing the activation
        # at runtime.
        lw = lw.reshape(c_last, img_after, img_after, output_dim)
        lw = jnp.transpose(lw, (1, 2, 0, 3)).reshape(fin, output_dim)
        f_pad = ((fin + 127) // 128) * 128
        wt = jnp.transpose(lw)                           # (O, F) lane-dense
        if f_pad != fin:
            wt = jnp.pad(wt, ((0, 0), (0, f_pad - fin)))
        self.lin_w = wt.reshape(output_dim, f_pad // 128,
                                128).astype(jnp.bfloat16)
        self.lin_b = lb.reshape(1, output_dim).astype(jnp.float32)
        self.lin_fin = fin
        self.lin_fpad = f_pad

        self._forward_jit = jax.jit(self._forward)

    def _forward(self, x_nchw, fmap_age_lbl_nchw):
        # NCHW (PyTorch convention) -> NHWC for the kernels.
        x = jnp.transpose(x_nchw, (0, 2, 3, 1)).astype(jnp.float32)
        # torch.column_stack == channel concat; fused into the block-0 kernel.
        fmap = fmap_age_lbl_nchw[:, :, :self.in_size, :self.in_size]
        fmap = jnp.transpose(fmap, (0, 2, 3, 1))

        out = conv_res_block(x, self.blocks[0], alpha=self.alpha,
                             extra_nhwc=fmap)
        for blk in self.blocks[1:]:
            out = conv_res_block(out, blk, alpha=self.alpha)

        B = out.shape[0]
        flat = out.reshape(B, -1).astype(jnp.bfloat16)   # NHWC flatten order
        assert flat.shape[1] == self.lin_fin
        if self.lin_fpad != self.lin_fin:
            flat = jnp.pad(flat, ((0, 0), (0, self.lin_fpad - self.lin_fin)))
        x3 = flat.reshape(B, self.lin_fpad // 128, 128)
        return linear_layer(x3, self.lin_w, self.lin_b, alpha=self.alpha)

    def __call__(self, x_nchw, fmap_age_lbl_nchw):
        return self._forward_jit(x_nchw, fmap_age_lbl_nchw)


# --------------------------------- demo ------------------------------------ #

if __name__ == "__main__":
    key = jax.random.PRNGKey(0)
    kp, kx, kf = jax.random.split(key, 3)

    B, in_size, n_ages = 2, 16, 5
    model = IDFGANDiscriminatorPallas(
        kp, norm_type="in2d", alpha_relu=ALPHA_RELU,
        min_features=8, max_features=64,
        n_inputs=3, n_output=8, output_dim=1,
        n_ages_classes=n_ages, down_steps=4, kernel_size=3, in_size=in_size)

    x = jax.random.normal(kx, (B, 3, in_size, in_size), jnp.float32)
    fmap_age_lbl = jax.random.normal(kf, (B, n_ages, in_size, in_size),
                                     jnp.float32)

    out = model(x, fmap_age_lbl)
    jax.block_until_ready(out)
    assert out.shape == (B, 1) and out.dtype == jnp.float32
    print("KERNEL_OK")
</pallas_src>

<mosaic_0001>
module attributes {stable_mosaic.version = 11 : i64} {
  func.func @_conv_block_kernel(%arg0: i32, %arg1: i32, %arg2: memref<1x256x27xbf16, #tpu.memory_space<vmem>>, %arg3: memref<1x256x5xbf16, #tpu.memory_space<vmem>>, %arg4: memref<27x16xbf16, #tpu.memory_space<vmem>>, %arg5: memref<1x16xf32, #tpu.memory_space<vmem>>, %arg6: memref<1x256x13xbf16, #tpu.memory_space<vmem>>) attributes {dimension_semantics = [#tpu.dimension_semantics<parallel>, #tpu.dimension_semantics<parallel>], iteration_bounds = array<i64: 2, 1>, scalar_prefetch = 0 : i64, scratch_operands = 0 : i64, tpu.core_type = #tpu.core_type<tc>, window_params = [{transform_indices = @transform_0, window_bounds = array<i64: 1, 256, 27>}, {transform_indices = @transform_1, window_bounds = array<i64: 1, 256, 5>}, {pipeline_mode = #tpu.pipeline_mode<synchronous>, transform_indices = @transform_2, window_bounds = array<i64: 27, 16>}, {pipeline_mode = #tpu.pipeline_mode<synchronous>, transform_indices = @transform_3, window_bounds = array<i64: 1, 16>}, {transform_indices = @transform_4, window_bounds = array<i64: 1, 256, 13>}]} {
    %c0 = arith.constant 0 : index
    %c0_0 = arith.constant 0 : index
    %c0_1 = arith.constant 0 : index
    %0 = vector.load %arg2[%c0, %c0_0, %c0_1] : memref<1x256x27xbf16, #tpu.memory_space<vmem>>, vector<1x256x27xbf16>
    %1 = vector.shape_cast %0 : vector<1x256x27xbf16> to vector<256x27xbf16>
    %c0_2 = arith.constant 0 : index
    %c0_3 = arith.constant 0 : index
    %2 = vector.load %arg4[%c0_2, %c0_3] : memref<27x16xbf16, #tpu.memory_space<vmem>>, vector<27x16xbf16>
    %cst = arith.constant dense<0.000000e+00> : vector<256x16xf32>
    %3 = tpu.matmul %1, %2, %cst {dimension_numbers = #tpu.dot_dimension_numbers<[1], [0], [0], [1], [0, 0, 1, 1], [], []>} : vector<256x27xbf16>, vector<27x16xbf16>, vector<256x16xf32> -> vector<256x16xf32>
    %c0_4 = arith.constant 0 : index
    %c0_5 = arith.constant 0 : index
    %4 = vector.load %arg5[%c0_4, %c0_5] : memref<1x16xf32, #tpu.memory_space<vmem>>, vector<1x16xf32>
    %5 = vector.broadcast %4 : vector<1x16xf32> to vector<256x16xf32>
    %6 = arith.addf %3, %5 : vector<256x16xf32>
    %7 = vector.extract_strided_slice %6 {offsets = [0, 0], sizes = [256, 8], strides = [1, 1]} : vector<256x16xf32> to vector<256x8xf32>
    %8 = vector.extract_strided_slice %6 {offsets = [0, 8], sizes = [256, 8], strides = [1, 1]} : vector<256x16xf32> to vector<256x8xf32>
    %cst_6 = arith.constant 0.000000e+00 : f32
    %9 = vector.broadcast %cst_6 : f32 to vector<256x8xf32>
    %10 = arith.cmpf ogt, %7, %9 : vector<256x8xf32>
    %cst_7 = arith.constant 1.500000e-01 : f32
    %11 = vector.broadcast %cst_7 : f32 to vector<256x8xf32>
    %12 = arith.mulf %11, %7 : vector<256x8xf32>
    %13 = arith.select %10, %7, %12 : vector<256x8xi1>, vector<256x8xf32>
    %14 = arith.addf %13, %8 : vector<256x8xf32>
    %15 = arith.truncf %14 : vector<256x8xf32> to vector<256x8xbf16>
    %c0_8 = arith.constant 0 : index
    %c0_9 = arith.constant 0 : index
    %c0_10 = arith.constant 0 : index
    %16 = vector.load %arg3[%c0_8, %c0_9, %c0_10] : memref<1x256x5xbf16, #tpu.memory_space<vmem>>, vector<1x256x5xbf16>
    %17 = vector.shape_cast %16 : vector<1x256x5xbf16> to vector<256x5xbf16>
    %18 = tpu.concatenate %15, %17 in 1 : vector<256x8xbf16>, vector<256x5xbf16> -> vector<256x13xbf16>
    %c0_11 = arith.constant 0 : index
    %c0_12 = arith.constant 0 : index
    %c0_13 = arith.constant 0 : index
    %19 = vector.load %arg6[%c0_11, %c0_12, %c0_13] : memref<1x256x13xbf16, #tpu.memory_space<vmem>>, vector<1x256x13xbf16>
    %20 = vector.shape_cast %19 : vector<1x256x13xbf16> to vector<256x13xbf16>
    %21 = vector.shape_cast %18 : vector<256x13xbf16> to vector<1x256x13xbf16>
    tpu.vector_store %arg6[%c0_11, %c0_12, %c0_13], %21 {strides = array<i32>} : memref<1x256x13xbf16, #tpu.memory_space<vmem>>, vector<1x256x13xbf16>,
    return
  }
  func.func @transform_0(%arg0: i32, %arg1: i32) -> (i32, i32, i32) {
    %c0_i32 = arith.constant 0 : i32
    %c0_i32_0 = arith.constant 0 : i32
    return %arg0, %arg1, %c0_i32 : i32, i32, i32
  }
  func.func @transform_1(%arg0: i32, %arg1: i32) -> (i32, i32, i32) {
    %c0_i32 = arith.constant 0 : i32
    %c0_i32_0 = arith.constant 0 : i32
    return %arg0, %arg1, %c0_i32 : i32, i32, i32
  }
  func.func @transform_2(%arg0: i32, %arg1: i32) -> (i32, i32) {
    %c0_i32 = arith.constant 0 : i32
    %c0_i32_0 = arith.constant 0 : i32
    %c0_i32_1 = arith.constant 0 : i32
    return %c0_i32, %c0_i32_0 : i32, i32
  }
  func.func @transform_3(%arg0: i32, %arg1: i32) -> (i32, i32) {
    %c0_i32 = arith.constant 0 : i32
    %c0_i32_0 = arith.constant 0 : i32
    %c0_i32_1 = arith.constant 0 : i32
    return %c0_i32, %c0_i32_0 : i32, i32
  }
  func.func @transform_4(%arg0: i32, %arg1: i32) -> (i32, i32, i32) {
    %c0_i32 = arith.constant 0 : i32
    %c0_i32_0 = arith.constant 0 : i32
    return %arg0, %arg1, %c0_i32 : i32, i32, i32
  }
}

module attributes {stable_mosaic.version = 11 : i64} {
  func.func @_fused_norm_block_kernel(%arg0: i32, %arg1: i32, %arg2: memref<1x64x117xbf16, #tpu.memory_space<vmem>>, %arg3: memref<117x16xbf16, #tpu.memory_space<vmem>>, %arg4: memref<13x16xbf16, #tpu.memory_space<vmem>>, %arg5: memref<1x16xf32, #tpu.memory_space<vmem>>, %arg6: memref<1x64x16xbf16, #tpu.memory_space<vmem>>, %arg7: memref<64x16xf32, #tpu.memory_space<vmem>>, %arg8: memref<2x16xf32, #tpu.memory_space<vmem>>) attributes {dimension_semantics = [#tpu.dimension_semantics<parallel>, #tpu.dimension_semantics<arbitrary>], iteration_bounds = array<i64: 2, 1>, scalar_prefetch = 0 : i64, scratch_operands = 2 : i64, tpu.core_type = #tpu.core_type<tc>, window_params = [{transform_indices = @transform_0, window_bounds = array<i64: 1, 64, 117>}, {pipeline_mode = #tpu.pipeline_mode<synchronous>, transform_indices = @transform_1, window_bounds = array<i64: 117, 16>}, {pipeline_mode = #tpu.pipeline_mode<synchronous>, transform_indices = @transform_2, window_bounds = array<i64: 13, 16>}, {pipeline_mode = #tpu.pipeline_mode<synchronous>, transform_indices = @transform_3, window_bounds = array<i64: 1, 16>}, {transform_indices = @transform_4, window_bounds = array<i64: 1, 64, 16>}]} {
    %c0_i32 = arith.constant 0 : i32
    %0 = arith.cmpi eq, %arg1, %c0_i32 : i32
    %1 = arith.extui %0 : i1 to i32
    %c0_i32_0 = arith.constant 0 : i32
    %2 = arith.cmpi ne, %1, %c0_i32_0 : i32
    scf.if %2 {
      %cst_23 = arith.constant 0.000000e+00 : f32
      %30 = vector.broadcast %cst_23 : f32 to vector<2x16xf32>
      %c0_24 = arith.constant 0 : index
      %c0_25 = arith.constant 0 : index
      %31 = vector.load %arg8[%c0_24, %c0_25] : memref<2x16xf32, #tpu.memory_space<vmem>>, vector<2x16xf32>
      tpu.vector_store %arg8[%c0_24, %c0_25], %30 {strides = array<i32>} : memref<2x16xf32, #tpu.memory_space<vmem>>, vector<2x16xf32>,
    } else {
    }
    %c0 = arith.constant 0 : index
    %c0_1 = arith.constant 0 : index
    %c0_2 = arith.constant 0 : index
    %3 = vector.load %arg2[%c0, %c0_1, %c0_2] : memref<1x64x117xbf16, #tpu.memory_space<vmem>>, vector<1x64x117xbf16>
    %4 = vector.shape_cast %3 : vector<1x64x117xbf16> to vector<64x117xbf16>
    %c0_3 = arith.constant 0 : index
    %c0_4 = arith.constant 0 : index
    %5 = vector.load %arg3[%c0_3, %c0_4] : memref<117x16xbf16, #tpu.memory_space<vmem>>, vector<117x16xbf16>
    %cst = arith.constant dense<0.000000e+00> : vector<64x16xf32>
    %6 = tpu.matmul %4, %5, %cst {dimension_numbers = #tpu.dot_dimension_numbers<[1], [0], [0], [1], [0, 0, 1, 1], [], []>} : vector<64x117xbf16>, vector<117x16xbf16>, vector<64x16xf32> -> vector<64x16xf32>
    %c0_5 = arith.constant 0 : index
    %c0_6 = arith.constant 0 : index
    %7 = vector.load %arg8[%c0_5, %c0_6] : memref<2x16xf32, #tpu.memory_space<vmem>>, vector<2x16xf32>
    %cst_7 = arith.constant dense<0.000000e+00> : vector<16xf32>
    %8 = vector.multi_reduction <add>, %6, %cst_7 [0] : vector<64x16xf32> to vector<16xf32>
    %9 = vector.shape_cast %8 : vector<16xf32> to vector<1x16xf32>
    %10 = arith.mulf %6, %6 : vector<64x16xf32>
    %cst_8 = arith.constant dense<0.000000e+00> : vector<16xf32>
    %11 = vector.multi_reduction <add>, %10, %cst_8 [0] : vector<64x16xf32> to vector<16xf32>
    %12 = vector.shape_cast %11 : vector<16xf32> to vector<1x16xf32>
    %13 = tpu.concatenate %9, %12 in 0 : vector<1x16xf32>, vector<1x16xf32> -> vector<2x16xf32>
    %14 = arith.addf %7, %13 : vector<2x16xf32>
    %c0_9 = arith.constant 0 : index
    %c0_10 = arith.constant 0 : index
    %15 = vector.load %arg8[%c0_9, %c0_10] : memref<2x16xf32, #tpu.memory_space<vmem>>, vector<2x16xf32>
    tpu.vector_store %arg8[%c0_9, %c0_10], %14 {strides = array<i32>} : memref<2x16xf32, #tpu.memory_space<vmem>>, vector<2x16xf32>,
    %16 = vector.extract_strided_slice %4 {offsets = [0, 0], sizes = [64, 13], strides = [1, 1]} : vector<64x117xbf16> to vector<64x13xbf16>
    %c0_11 = arith.constant 0 : index
    %c0_12 = arith.constant 0 : index
    %17 = vector.load %arg4[%c0_11, %c0_12] : memref<13x16xbf16, #tpu.memory_space<vmem>>, vector<13x16xbf16>
    %cst_13 = arith.constant dense<0.000000e+00> : vector<64x16xf32>
    %18 = tpu.matmul %16, %17, %cst_13 {dimension_numbers = #tpu.dot_dimension_numbers<[1], [0], [0], [1], [0, 0, 1, 1], [], []>} : vector<64x13xbf16>, vector<13x16xbf16>, vector<64x16xf32> -> vector<64x16xf32>
    %c0_14 = arith.constant 0 : index
    %c0_15 = arith.constant 0 : index
    %19 = vector.load %arg5[%c0_14, %c0_15] : memref<1x16xf32, #tpu.memory_space<vmem>>, vector<1x16xf32>
    %20 = vector.broadcast %19 : vector<1x16xf32> to vector<64x16xf32>
    %21 = arith.addf %18, %20 : vector<64x16xf32>
    %c0_16 = arith.constant 0 : index
    %c0_17 = arith.constant 0 : index
    %22 = vector.load %arg7[%c0_16, %c0_17] : memref<64x16xf32, #tpu.memory_space<vmem>>, vector<64x16xf32>
    tpu.vector_store %arg7[%c0_16, %c0_17], %6 {strides = array<i32>} : memref<64x16xf32, #tpu.memory_space<vmem>>, vector<64x16xf32>,
    %23 = arith.truncf %21 : vector<64x16xf32> to vector<64x16xbf16>
    %c0_18 = arith.constant 0 : index
    %c0_19 = arith.constant 0 : index
    %c0_20 = arith.constant 0 : index
    %24 = vector.load %arg6[%c0_18, %c0_19, %c0_20] : memref<1x64x16xbf16, #tpu.memory_space<vmem>>, vector<1x64x16xbf16>
    %25 = vector.shape_cast %24 : vector<1x64x16xbf16> to vector<64x16xbf16>
    %26 = vector.shape_cast %23 : vector<64x16xbf16> to vector<1x64x16xbf16>
    tpu.vector_store %arg6[%c0_18, %c0_19, %c0_20], %26 {strides = array<i32>} : memref<1x64x16xbf16, #tpu.memory_space<vmem>>, vector<1x64x16xbf16>,
    %c0_i32_21 = arith.constant 0 : i32
    %27 = arith.cmpi eq, %arg1, %c0_i32_21 : i32
    %28 = arith.extui %27 : i1 to i32
    %c0_i32_22 = arith.constant 0 : i32
    %29 = arith.cmpi ne, %28, %c0_i32_22 : i32
    scf.if %29 {
      %c0_23 = arith.constant 0 : index
      %c0_24 = arith.constant 0 : index
      %30 = vector.load %arg8[%c0_23, %c0_24] : memref<2x16xf32, #tpu.memory_space<vmem>>, vector<2x16xf32>
      %31 = vector.extract_strided_slice %30 {offsets = [0, 0], sizes = [1, 16], strides = [1, 1]} : vector<2x16xf32> to vector<1x16xf32>
      %cst_25 = arith.constant 1.562500e-02 : f32
      %32 = vector.broadcast %cst_25 : f32 to vector<1x16xf32>
      %33 = arith.mulf %31, %32 : vector<1x16xf32>
      %34 = vector.extract_strided_slice %30 {offsets = [1, 0], sizes = [1, 16], strides = [1, 1]} : vector<2x16xf32> to vector<1x16xf32>
      %cst_26 = arith.constant 1.562500e-02 : f32
      %35 = vector.broadcast %cst_26 : f32 to vector<1x16xf32>
      %36 = arith.mulf %34, %35 : vector<1x16xf32>
      %37 = arith.mulf %33, %33 : vector<1x16xf32>
      %38 = arith.subf %36, %37 : vector<1x16xf32>
      %cst_27 = arith.constant 0.000000e+00 : f32
      %39 = vector.broadcast %cst_27 : f32 to vector<1x16xf32>
      %40 = arith.maximumf %38, %39 : vector<1x16xf32>
      %cst_28 = arith.constant 9.99999974E-6 : f32
      %41 = vector.broadcast %cst_28 : f32 to vector<1x16xf32>
      %42 = arith.addf %40, %41 : vector<1x16xf32>
      %43 = math.rsqrt %42 : vector<1x16xf32>
      %c0_29 = arith.constant 0 : index
      %c0_30 = arith.constant 0 : index
      %44 = vector.load %arg7[%c0_29, %c0_30] : memref<64x16xf32, #tpu.memory_space<vmem>>, vector<64x16xf32>
      %45 = vector.broadcast %33 : vector<1x16xf32> to vector<64x16xf32>
      %46 = arith.subf %44, %45 : vector<64x16xf32>
      %47 = vector.broadcast %43 : vector<1x16xf32> to vector<64x16xf32>
      %48 = arith.mulf %46, %47 : vector<64x16xf32>
      %cst_31 = arith.constant 0.000000e+00 : f32
      %49 = vector.broadcast %cst_31 : f32 to vector<64x16xf32>
      %50 = arith.cmpf ogt, %48, %49 : vector<64x16xf32>
      %cst_32 = arith.constant 1.500000e-01 : f32
      %51 = vector.broadcast %cst_32 : f32 to vector<64x16xf32>
      %52 = arith.mulf %51, %48 : vector<64x16xf32>
      %53 = arith.select %50, %48, %52 : vector<64x16xi1>, vector<64x16xf32>
      %c0_33 = arith.constant 0 : index
      %c0_34 = arith.constant 0 : index
      %c0_35 = arith.constant 0 : index
      %54 = vector.load %arg6[%c0_33, %c0_34, %c0_35] : memref<1x64x16xbf16, #tpu.memory_space<vmem>>, vector<1x64x16xbf16>
      %55 = vector.shape_cast %54 : vector<1x64x16xbf16> to vector<64x16xbf16>
      %56 = arith.extf %55 : vector<64x16xbf16> to vector<64x16xf32>
      %57 = arith.addf %53, %56 : vector<64x16xf32>
      %58 = arith.truncf %57 : vector<64x16xf32> to vector<64x16xbf16>
      %c0_36 = arith.constant 0 : index
      %c0_37 = arith.constant 0 : index
      %c0_38 = arith.constant 0 : index
      %59 = vector.load %arg6[%c0_36, %c0_37, %c0_38] : memref<1x64x16xbf16, #tpu.memory_space<vmem>>, vector<1x64x16xbf16>
      %60 = vector.shape_cast %59 : vector<1x64x16xbf16> to vector<64x16xbf16>
      %61 = vector.shape_cast %58 : vector<64x16xbf16> to vector<1x64x16xbf16>
      tpu.vector_store %arg6[%c0_36, %c0_37, %c0_38], %61 {strides = array<i32>} : memref<1x64x16xbf16, #tpu.memory_space<vmem>>, vector<1x64x16xbf16>,
    } else {
    }
    return
  }
  func.func @transform_0(%arg0: i32, %arg1: i32) -> (i32, i32, i32) {
    %c0_i32 = arith.constant 0 : i32
    %c0_i32_0 = arith.constant 0 : i32
    return %arg0, %arg1, %c0_i32 : i32, i32, i32
  }
  func.func @transform_1(%arg0: i32, %arg1: i32) -> (i32, i32) {
    %c0_i32 = arith.constant 0 : i32
    %c0_i32_0 = arith.constant 0 : i32
    %c0_i32_1 = arith.constant 0 : i32
    return %c0_i32, %c0_i32_0 : i32, i32
  }
  func.func @transform_2(%arg0: i32, %arg1: i32) -> (i32, i32) {
    %c0_i32 = arith.constant 0 : i32
    %c0_i32_0 = arith.constant 0 : i32
    %c0_i32_1 = arith.constant 0 : i32
    return %c0_i32, %c0_i32_0 : i32, i32
  }
  func.func @transform_3(%arg0: i32, %arg1: i32) -> (i32, i32) {
    %c0_i32 = arith.constant 0 : i32
    %c0_i32_0 = arith.constant 0 : i32
    %c0_i32_1 = arith.constant 0 : i32
    return %c0_i32, %c0_i32_0 : i32, i32
  }
  func.func @transform_4(%arg0: i32, %arg1: i32) -> (i32, i32, i32) {
    %c0_i32 = arith.constant 0 : i32
    %c0_i32_0 = arith.constant 0 : i32
    %c0_i32_1 = arith.constant 0 : i32
    return %arg0, %c0_i32, %c0_i32_0 : i32, i32, i32
  }
}

module attributes {stable_mosaic.version = 11 : i64} {
  func.func @_fused_norm_block_kernel(%arg0: i32, %arg1: i32, %arg2: memref<1x16x144xbf16, #tpu.memory_space<vmem>>, %arg3: memref<144x32xbf16, #tpu.memory_space<vmem>>, %arg4: memref<16x32xbf16, #tpu.memory_space<vmem>>, %arg5: memref<1x32xf32, #tpu.memory_space<vmem>>, %arg6: memref<1x16x32xbf16, #tpu.memory_space<vmem>>, %arg7: memref<16x32xf32, #tpu.memory_space<vmem>>, %arg8: memref<2x32xf32, #tpu.memory_space<vmem>>) attributes {dimension_semantics = [#tpu.dimension_semantics<parallel>, #tpu.dimension_semantics<arbitrary>], iteration_bounds = array<i64: 2, 1>, scalar_prefetch = 0 : i64, scratch_operands = 2 : i64, tpu.core_type = #tpu.core_type<tc>, window_params = [{transform_indices = @transform_0, window_bounds = array<i64: 1, 16, 144>}, {pipeline_mode = #tpu.pipeline_mode<synchronous>, transform_indices = @transform_1, window_bounds = array<i64: 144, 32>}, {pipeline_mode = #tpu.pipeline_mode<synchronous>, transform_indices = @transform_2, window_bounds = array<i64: 16, 32>}, {pipeline_mode = #tpu.pipeline_mode<synchronous>, transform_indices = @transform_3, window_bounds = array<i64: 1, 32>}, {transform_indices = @transform_4, window_bounds = array<i64: 1, 16, 32>}]} {
    %c0_i32 = arith.constant 0 : i32
    %0 = arith.cmpi eq, %arg1, %c0_i32 : i32
    %1 = arith.extui %0 : i1 to i32
    %c0_i32_0 = arith.constant 0 : i32
    %2 = arith.cmpi ne, %1, %c0_i32_0 : i32
    scf.if %2 {
      %cst_23 = arith.constant 0.000000e+00 : f32
      %30 = vector.broadcast %cst_23 : f32 to vector<2x32xf32>
      %c0_24 = arith.constant 0 : index
      %c0_25 = arith.constant 0 : index
      %31 = vector.load %arg8[%c0_24, %c0_25] : memref<2x32xf32, #tpu.memory_space<vmem>>, vector<2x32xf32>
      tpu.vector_store %arg8[%c0_24, %c0_25], %30 {strides = array<i32>} : memref<2x32xf32, #tpu.memory_space<vmem>>, vector<2x32xf32>,
    } else {
    }
    %c0 = arith.constant 0 : index
    %c0_1 = arith.constant 0 : index
    %c0_2 = arith.constant 0 : index
    %3 = vector.load %arg2[%c0, %c0_1, %c0_2] : memref<1x16x144xbf16, #tpu.memory_space<vmem>>, vector<1x16x144xbf16>
    %4 = vector.shape_cast %3 : vector<1x16x144xbf16> to vector<16x144xbf16>
    %c0_3 = arith.constant 0 : index
    %c0_4 = arith.constant 0 : index
    %5 = vector.load %arg3[%c0_3, %c0_4] : memref<144x32xbf16, #tpu.memory_space<vmem>>, vector<144x32xbf16>
    %cst = arith.constant dense<0.000000e+00> : vector<16x32xf32>
    %6 = tpu.matmul %4, %5, %cst {dimension_numbers = #tpu.dot_dimension_numbers<[1], [0], [0], [1], [0, 0, 1, 1], [], []>} : vector<16x144xbf16>, vector<144x32xbf16>, vector<16x32xf32> -> vector<16x32xf32>
    %c0_5 = arith.constant 0 : index
    %c0_6 = arith.constant 0 : index
    %7 = vector.load %arg8[%c0_5, %c0_6] : memref<2x32xf32, #tpu.memory_space<vmem>>, vector<2x32xf32>
    %cst_7 = arith.constant dense<0.000000e+00> : vector<32xf32>
    %8 = vector.multi_reduction <add>, %6, %cst_7 [0] : vector<16x32xf32> to vector<32xf32>
    %9 = vector.shape_cast %8 : vector<32xf32> to vector<1x32xf32>
    %10 = arith.mulf %6, %6 : vector<16x32xf32>
    %cst_8 = arith.constant dense<0.000000e+00> : vector<32xf32>
    %11 = vector.multi_reduction <add>, %10, %cst_8 [0] : vector<16x32xf32> to vector<32xf32>
    %12 = vector.shape_cast %11 : vector<32xf32> to vector<1x32xf32>
    %13 = tpu.concatenate %9, %12 in 0 : vector<1x32xf32>, vector<1x32xf32> -> vector<2x32xf32>
    %14 = arith.addf %7, %13 : vector<2x32xf32>
    %c0_9 = arith.constant 0 : index
    %c0_10 = arith.constant 0 : index
    %15 = vector.load %arg8[%c0_9, %c0_10] : memref<2x32xf32, #tpu.memory_space<vmem>>, vector<2x32xf32>
    tpu.vector_store %arg8[%c0_9, %c0_10], %14 {strides = array<i32>} : memref<2x32xf32, #tpu.memory_space<vmem>>, vector<2x32xf32>,
    %16 = vector.extract_strided_slice %4 {offsets = [0, 0], sizes = [16, 16], strides = [1, 1]} : vector<16x144xbf16> to vector<16x16xbf16>
    %c0_11 = arith.constant 0 : index
    %c0_12 = arith.constant 0 : index
    %17 = vector.load %arg4[%c0_11, %c0_12] : memref<16x32xbf16, #tpu.memory_space<vmem>>, vector<16x32xbf16>
    %cst_13 = arith.constant dense<0.000000e+00> : vector<16x32xf32>
    %18 = tpu.matmul %16, %17, %cst_13 {dimension_numbers = #tpu.dot_dimension_numbers<[1], [0], [0], [1], [0, 0, 1, 1], [], []>} : vector<16x16xbf16>, vector<16x32xbf16>, vector<16x32xf32> -> vector<16x32xf32>
    %c0_14 = arith.constant 0 : index
    %c0_15 = arith.constant 0 : index
    %19 = vector.load %arg5[%c0_14, %c0_15] : memref<1x32xf32, #tpu.memory_space<vmem>>, vector<1x32xf32>
    %20 = vector.broadcast %19 : vector<1x32xf32> to vector<16x32xf32>
    %21 = arith.addf %18, %20 : vector<16x32xf32>
    %c0_16 = arith.constant 0 : index
    %c0_17 = arith.constant 0 : index
    %22 = vector.load %arg7[%c0_16, %c0_17] : memref<16x32xf32, #tpu.memory_space<vmem>>, vector<16x32xf32>
    tpu.vector_store %arg7[%c0_16, %c0_17], %6 {strides = array<i32>} : memref<16x32xf32, #tpu.memory_space<vmem>>, vector<16x32xf32>,
    %23 = arith.truncf %21 : vector<16x32xf32> to vector<16x32xbf16>
    %c0_18 = arith.constant 0 : index
    %c0_19 = arith.constant 0 : index
    %c0_20 = arith.constant 0 : index
    %24 = vector.load %arg6[%c0_18, %c0_19, %c0_20] : memref<1x16x32xbf16, #tpu.memory_space<vmem>>, vector<1x16x32xbf16>
    %25 = vector.shape_cast %24 : vector<1x16x32xbf16> to vector<16x32xbf16>
    %26 = vector.shape_cast %23 : vector<16x32xbf16> to vector<1x16x32xbf16>
    tpu.vector_store %arg6[%c0_18, %c0_19, %c0_20], %26 {strides = array<i32>} : memref<1x16x32xbf16, #tpu.memory_space<vmem>>, vector<1x16x32xbf16>,
    %c0_i32_21 = arith.constant 0 : i32
    %27 = arith.cmpi eq, %arg1, %c0_i32_21 : i32
    %28 = arith.extui %27 : i1 to i32
    %c0_i32_22 = arith.constant 0 : i32
    %29 = arith.cmpi ne, %28, %c0_i32_22 : i32
    scf.if %29 {
      %c0_23 = arith.constant 0 : index
      %c0_24 = arith.constant 0 : index
      %30 = vector.load %arg8[%c0_23, %c0_24] : memref<2x32xf32, #tpu.memory_space<vmem>>, vector<2x32xf32>
      %31 = vector.extract_strided_slice %30 {offsets = [0, 0], sizes = [1, 32], strides = [1, 1]} : vector<2x32xf32> to vector<1x32xf32>
      %cst_25 = arith.constant 6.250000e-02 : f32
      %32 = vector.broadcast %cst_25 : f32 to vector<1x32xf32>
      %33 = arith.mulf %31, %32 : vector<1x32xf32>
      %34 = vector.extract_strided_slice %30 {offsets = [1, 0], sizes = [1, 32], strides = [1, 1]} : vector<2x32xf32> to vector<1x32xf32>
      %cst_26 = arith.constant 6.250000e-02 : f32
      %35 = vector.broadcast %cst_26 : f32 to vector<1x32xf32>
      %36 = arith.mulf %34, %35 : vector<1x32xf32>
      %37 = arith.mulf %33, %33 : vector<1x32xf32>
      %38 = arith.subf %36, %37 : vector<1x32xf32>
      %cst_27 = arith.constant 0.000000e+00 : f32
      %39 = vector.broadcast %cst_27 : f32 to vector<1x32xf32>
      %40 = arith.maximumf %38, %39 : vector<1x32xf32>
      %cst_28 = arith.constant 9.99999974E-6 : f32
      %41 = vector.broadcast %cst_28 : f32 to vector<1x32xf32>
      %42 = arith.addf %40, %41 : vector<1x32xf32>
      %43 = math.rsqrt %42 : vector<1x32xf32>
      %c0_29 = arith.constant 0 : index
      %c0_30 = arith.constant 0 : index
      %44 = vector.load %arg7[%c0_29, %c0_30] : memref<16x32xf32, #tpu.memory_space<vmem>>, vector<16x32xf32>
      %45 = vector.broadcast %33 : vector<1x32xf32> to vector<16x32xf32>
      %46 = arith.subf %44, %45 : vector<16x32xf32>
      %47 = vector.broadcast %43 : vector<1x32xf32> to vector<16x32xf32>
      %48 = arith.mulf %46, %47 : vector<16x32xf32>
      %cst_31 = arith.constant 0.000000e+00 : f32
      %49 = vector.broadcast %cst_31 : f32 to vector<16x32xf32>
      %50 = arith.cmpf ogt, %48, %49 : vector<16x32xf32>
      %cst_32 = arith.constant 1.500000e-01 : f32
      %51 = vector.broadcast %cst_32 : f32 to vector<16x32xf32>
      %52 = arith.mulf %51, %48 : vector<16x32xf32>
      %53 = arith.select %50, %48, %52 : vector<16x32xi1>, vector<16x32xf32>
      %c0_33 = arith.constant 0 : index
      %c0_34 = arith.constant 0 : index
      %c0_35 = arith.constant 0 : index
      %54 = vector.load %arg6[%c0_33, %c0_34, %c0_35] : memref<1x16x32xbf16, #tpu.memory_space<vmem>>, vector<1x16x32xbf16>
      %55 = vector.shape_cast %54 : vector<1x16x32xbf16> to vector<16x32xbf16>
      %56 = arith.extf %55 : vector<16x32xbf16> to vector<16x32xf32>
      %57 = arith.addf %53, %56 : vector<16x32xf32>
      %58 = arith.truncf %57 : vector<16x32xf32> to vector<16x32xbf16>
      %c0_36 = arith.constant 0 : index
      %c0_37 = arith.constant 0 : index
      %c0_38 = arith.constant 0 : index
      %59 = vector.load %arg6[%c0_36, %c0_37, %c0_38] : memref<1x16x32xbf16, #tpu.memory_space<vmem>>, vector<1x16x32xbf16>
      %60 = vector.shape_cast %59 : vector<1x16x32xbf16> to vector<16x32xbf16>
      %61 = vector.shape_cast %58 : vector<16x32xbf16> to vector<1x16x32xbf16>
      tpu.vector_store %arg6[%c0_36, %c0_37, %c0_38], %61 {strides = array<i32>} : memref<1x16x32xbf16, #tpu.memory_space<vmem>>, vector<1x16x32xbf16>,
    } else {
    }
    return
  }
  func.func @transform_0(%arg0: i32, %arg1: i32) -> (i32, i32, i32) {
    %c0_i32 = arith.constant 0 : i32
    %c0_i32_0 = arith.constant 0 : i32
    return %arg0, %arg1, %c0_i32 : i32, i32, i32
  }
  func.func @transform_1(%arg0: i32, %arg1: i32) -> (i32, i32) {
    %c0_i32 = arith.constant 0 : i32
    %c0_i32_0 = arith.constant 0 : i32
    %c0_i32_1 = arith.constant 0 : i32
    return %c0_i32, %c0_i32_0 : i32, i32
  }
  func.func @transform_2(%arg0: i32, %arg1: i32) -> (i32, i32) {
    %c0_i32 = arith.constant 0 : i32
    %c0_i32_0 = arith.constant 0 : i32
    %c0_i32_1 = arith.constant 0 : i32
    return %c0_i32, %c0_i32_0 : i32, i32
  }
  func.func @transform_3(%arg0: i32, %arg1: i32) -> (i32, i32) {
    %c0_i32 = arith.constant 0 : i32
    %c0_i32_0 = arith.constant 0 : i32
    %c0_i32_1 = arith.constant 0 : i32
    return %c0_i32, %c0_i32_0 : i32, i32
  }
  func.func @transform_4(%arg0: i32, %arg1: i32) -> (i32, i32, i32) {
    %c0_i32 = arith.constant 0 : i32
    %c0_i32_0 = arith.constant 0 : i32
    %c0_i32_1 = arith.constant 0 : i32
    return %arg0, %c0_i32, %c0_i32_0 : i32, i32, i32
  }
}

module attributes {stable_mosaic.version = 11 : i64} {
  func.func @_fused_norm_block_kernel(%arg0: i32, %arg1: i32, %arg2: memref<1x4x288xbf16, #tpu.memory_space<vmem>>, %arg3: memref<288x64xbf16, #tpu.memory_space<vmem>>, %arg4: memref<32x64xbf16, #tpu.memory_space<vmem>>, %arg5: memref<1x64xf32, #tpu.memory_space<vmem>>, %arg6: memref<1x4x64xbf16, #tpu.memory_space<vmem>>, %arg7: memref<4x64xf32, #tpu.memory_space<vmem>>, %arg8: memref<2x64xf32, #tpu.memory_space<vmem>>) attributes {dimension_semantics = [#tpu.dimension_semantics<parallel>, #tpu.dimension_semantics<arbitrary>], iteration_bounds = array<i64: 2, 1>, scalar_prefetch = 0 : i64, scratch_operands = 2 : i64, tpu.core_type = #tpu.core_type<tc>, window_params = [{transform_indices = @transform_0, window_bounds = array<i64: 1, 4, 288>}, {pipeline_mode = #tpu.pipeline_mode<synchronous>, transform_indices = @transform_1, window_bounds = array<i64: 288, 64>}, {pipeline_mode = #tpu.pipeline_mode<synchronous>, transform_indices = @transform_2, window_bounds = array<i64: 32, 64>}, {pipeline_mode = #tpu.pipeline_mode<synchronous>, transform_indices = @transform_3, window_bounds = array<i64: 1, 64>}, {transform_indices = @transform_4, window_bounds = array<i64: 1, 4, 64>}]} {
    %c0_i32 = arith.constant 0 : i32
    %0 = arith.cmpi eq, %arg1, %c0_i32 : i32
    %1 = arith.extui %0 : i1 to i32
    %c0_i32_0 = arith.constant 0 : i32
    %2 = arith.cmpi ne, %1, %c0_i32_0 : i32
    scf.if %2 {
      %cst_23 = arith.constant 0.000000e+00 : f32
      %30 = vector.broadcast %cst_23 : f32 to vector<2x64xf32>
      %c0_24 = arith.constant 0 : index
      %c0_25 = arith.constant 0 : index
      %31 = vector.load %arg8[%c0_24, %c0_25] : memref<2x64xf32, #tpu.memory_space<vmem>>, vector<2x64xf32>
      tpu.vector_store %arg8[%c0_24, %c0_25], %30 {strides = array<i32>} : memref<2x64xf32, #tpu.memory_space<vmem>>, vector<2x64xf32>,
    } else {
    }
    %c0 = arith.constant 0 : index
    %c0_1 = arith.constant 0 : index
    %c0_2 = arith.constant 0 : index
    %3 = vector.load %arg2[%c0, %c0_1, %c0_2] : memref<1x4x288xbf16, #tpu.memory_space<vmem>>, vector<1x4x288xbf16>
    %4 = vector.shape_cast %3 : vector<1x4x288xbf16> to vector<4x288xbf16>
    %c0_3 = arith.constant 0 : index
    %c0_4 = arith.constant 0 : index
    %5 = vector.load %arg3[%c0_3, %c0_4] : memref<288x64xbf16, #tpu.memory_space<vmem>>, vector<288x64xbf16>
    %cst = arith.constant dense<0.000000e+00> : vector<4x64xf32>
    %6 = tpu.matmul %4, %5, %cst {dimension_numbers = #tpu.dot_dimension_numbers<[1], [0], [0], [1], [0, 0, 1, 1], [], []>} : vector<4x288xbf16>, vector<288x64xbf16>, vector<4x64xf32> -> vector<4x64xf32>
    %c0_5 = arith.constant 0 : index
    %c0_6 = arith.constant 0 : index
    %7 = vector.load %arg8[%c0_5, %c0_6] : memref<2x64xf32, #tpu.memory_space<vmem>>, vector<2x64xf32>
    %cst_7 = arith.constant dense<0.000000e+00> : vector<64xf32>
    %8 = vector.multi_reduction <add>, %6, %cst_7 [0] : vector<4x64xf32> to vector<64xf32>
    %9 = vector.shape_cast %8 : vector<64xf32> to vector<1x64xf32>
    %10 = arith.mulf %6, %6 : vector<4x64xf32>
    %cst_8 = arith.constant dense<0.000000e+00> : vector<64xf32>
    %11 = vector.multi_reduction <add>, %10, %cst_8 [0] : vector<4x64xf32> to vector<64xf32>
    %12 = vector.shape_cast %11 : vector<64xf32> to vector<1x64xf32>
    %13 = tpu.concatenate %9, %12 in 0 : vector<1x64xf32>, vector<1x64xf32> -> vector<2x64xf32>
    %14 = arith.addf %7, %13 : vector<2x64xf32>
    %c0_9 = arith.constant 0 : index
    %c0_10 = arith.constant 0 : index
    %15 = vector.load %arg8[%c0_9, %c0_10] : memref<2x64xf32, #tpu.memory_space<vmem>>, vector<2x64xf32>
    tpu.vector_store %arg8[%c0_9, %c0_10], %14 {strides = array<i32>} : memref<2x64xf32, #tpu.memory_space<vmem>>, vector<2x64xf32>,
    %16 = vector.extract_strided_slice %4 {offsets = [0, 0], sizes = [4, 32], strides = [1, 1]} : vector<4x288xbf16> to vector<4x32xbf16>
    %c0_11 = arith.constant 0 : index
    %c0_12 = arith.constant 0 : index
    %17 = vector.load %arg4[%c0_11, %c0_12] : memref<32x64xbf16, #tpu.memory_space<vmem>>, vector<32x64xbf16>
    %cst_13 = arith.constant dense<0.000000e+00> : vector<4x64xf32>
    %18 = tpu.matmul %16, %17, %cst_13 {dimension_numbers = #tpu.dot_dimension_numbers<[1], [0], [0], [1], [0, 0, 1, 1], [], []>} : vector<4x32xbf16>, vector<32x64xbf16>, vector<4x64xf32> -> vector<4x64xf32>
    %c0_14 = arith.constant 0 : index
    %c0_15 = arith.constant 0 : index
    %19 = vector.load %arg5[%c0_14, %c0_15] : memref<1x64xf32, #tpu.memory_space<vmem>>, vector<1x64xf32>
    %20 = vector.broadcast %19 : vector<1x64xf32> to vector<4x64xf32>
    %21 = arith.addf %18, %20 : vector<4x64xf32>
    %c0_16 = arith.constant 0 : index
    %c0_17 = arith.constant 0 : index
    %22 = vector.load %arg7[%c0_16, %c0_17] : memref<4x64xf32, #tpu.memory_space<vmem>>, vector<4x64xf32>
    tpu.vector_store %arg7[%c0_16, %c0_17], %6 {strides = array<i32>} : memref<4x64xf32, #tpu.memory_space<vmem>>, vector<4x64xf32>,
    %23 = arith.truncf %21 : vector<4x64xf32> to vector<4x64xbf16>
    %c0_18 = arith.constant 0 : index
    %c0_19 = arith.constant 0 : index
    %c0_20 = arith.constant 0 : index
    %24 = vector.load %arg6[%c0_18, %c0_19, %c0_20] : memref<1x4x64xbf16, #tpu.memory_space<vmem>>, vector<1x4x64xbf16>
    %25 = vector.shape_cast %24 : vector<1x4x64xbf16> to vector<4x64xbf16>
    %26 = vector.shape_cast %23 : vector<4x64xbf16> to vector<1x4x64xbf16>
    tpu.vector_store %arg6[%c0_18, %c0_19, %c0_20], %26 {strides = array<i32>} : memref<1x4x64xbf16, #tpu.memory_space<vmem>>, vector<1x4x64xbf16>,
    %c0_i32_21 = arith.constant 0 : i32
    %27 = arith.cmpi eq, %arg1, %c0_i32_21 : i32
    %28 = arith.extui %27 : i1 to i32
    %c0_i32_22 = arith.constant 0 : i32
    %29 = arith.cmpi ne, %28, %c0_i32_22 : i32
    scf.if %29 {
      %c0_23 = arith.constant 0 : index
      %c0_24 = arith.constant 0 : index
      %30 = vector.load %arg8[%c0_23, %c0_24] : memref<2x64xf32, #tpu.memory_space<vmem>>, vector<2x64xf32>
      %31 = vector.extract_strided_slice %30 {offsets = [0, 0], sizes = [1, 64], strides = [1, 1]} : vector<2x64xf32> to vector<1x64xf32>
      %cst_25 = arith.constant 2.500000e-01 : f32
      %32 = vector.broadcast %cst_25 : f32 to vector<1x64xf32>
      %33 = arith.mulf %31, %32 : vector<1x64xf32>
      %34 = vector.extract_strided_slice %30 {offsets = [1, 0], sizes = [1, 64], strides = [1, 1]} : vector<2x64xf32> to vector<1x64xf32>
      %cst_26 = arith.constant 2.500000e-01 : f32
      %35 = vector.broadcast %cst_26 : f32 to vector<1x64xf32>
      %36 = arith.mulf %34, %35 : vector<1x64xf32>
      %37 = arith.mulf %33, %33 : vector<1x64xf32>
      %38 = arith.subf %36, %37 : vector<1x64xf32>
      %cst_27 = arith.constant 0.000000e+00 : f32
      %39 = vector.broadcast %cst_27 : f32 to vector<1x64xf32>
      %40 = arith.maximumf %38, %39 : vector<1x64xf32>
      %cst_28 = arith.constant 9.99999974E-6 : f32
      %41 = vector.broadcast %cst_28 : f32 to vector<1x64xf32>
      %42 = arith.addf %40, %41 : vector<1x64xf32>
      %43 = math.rsqrt %42 : vector<1x64xf32>
      %c0_29 = arith.constant 0 : index
      %c0_30 = arith.constant 0 : index
      %44 = vector.load %arg7[%c0_29, %c0_30] : memref<4x64xf32, #tpu.memory_space<vmem>>, vector<4x64xf32>
      %45 = vector.broadcast %33 : vector<1x64xf32> to vector<4x64xf32>
      %46 = arith.subf %44, %45 : vector<4x64xf32>
      %47 = vector.broadcast %43 : vector<1x64xf32> to vector<4x64xf32>
      %48 = arith.mulf %46, %47 : vector<4x64xf32>
      %cst_31 = arith.constant 0.000000e+00 : f32
      %49 = vector.broadcast %cst_31 : f32 to vector<4x64xf32>
      %50 = arith.cmpf ogt, %48, %49 : vector<4x64xf32>
      %cst_32 = arith.constant 1.500000e-01 : f32
      %51 = vector.broadcast %cst_32 : f32 to vector<4x64xf32>
      %52 = arith.mulf %51, %48 : vector<4x64xf32>
      %53 = arith.select %50, %48, %52 : vector<4x64xi1>, vector<4x64xf32>
      %c0_33 = arith.constant 0 : index
      %c0_34 = arith.constant 0 : index
      %c0_35 = arith.constant 0 : index
      %54 = vector.load %arg6[%c0_33, %c0_34, %c0_35] : memref<1x4x64xbf16, #tpu.memory_space<vmem>>, vector<1x4x64xbf16>
      %55 = vector.shape_cast %54 : vector<1x4x64xbf16> to vector<4x64xbf16>
      %56 = arith.extf %55 : vector<4x64xbf16> to vector<4x64xf32>
      %57 = arith.addf %53, %56 : vector<4x64xf32>
      %58 = arith.truncf %57 : vector<4x64xf32> to vector<4x64xbf16>
      %c0_36 = arith.constant 0 : index
      %c0_37 = arith.constant 0 : index
      %c0_38 = arith.constant 0 : index
      %59 = vector.load %arg6[%c0_36, %c0_37, %c0_38] : memref<1x4x64xbf16, #tpu.memory_space<vmem>>, vector<1x4x64xbf16>
      %60 = vector.shape_cast %59 : vector<1x4x64xbf16> to vector<4x64xbf16>
      %61 = vector.shape_cast %58 : vector<4x64xbf16> to vector<1x4x64xbf16>
      tpu.vector_store %arg6[%c0_36, %c0_37, %c0_38], %61 {strides = array<i32>} : memref<1x4x64xbf16, #tpu.memory_space<vmem>>, vector<1x4x64xbf16>,
    } else {
    }
    return
  }
  func.func @transform_0(%arg0: i32, %arg1: i32) -> (i32, i32, i32) {
    %c0_i32 = arith.constant 0 : i32
    %c0_i32_0 = arith.constant 0 : i32
    return %arg0, %arg1, %c0_i32 : i32, i32, i32
  }
  func.func @transform_1(%arg0: i32, %arg1: i32) -> (i32, i32) {
    %c0_i32 = arith.constant 0 : i32
    %c0_i32_0 = arith.constant 0 : i32
    %c0_i32_1 = arith.constant 0 : i32
    return %c0_i32, %c0_i32_0 : i32, i32
  }
  func.func @transform_2(%arg0: i32, %arg1: i32) -> (i32, i32) {
    %c0_i32 = arith.constant 0 : i32
    %c0_i32_0 = arith.constant 0 : i32
    %c0_i32_1 = arith.constant 0 : i32
    return %c0_i32, %c0_i32_0 : i32, i32
  }
  func.func @transform_3(%arg0: i32, %arg1: i32) -> (i32, i32) {
    %c0_i32 = arith.constant 0 : i32
    %c0_i32_0 = arith.constant 0 : i32
    %c0_i32_1 = arith.constant 0 : i32
    return %c0_i32, %c0_i32_0 : i32, i32
  }
  func.func @transform_4(%arg0: i32, %arg1: i32) -> (i32, i32, i32) {
    %c0_i32 = arith.constant 0 : i32
    %c0_i32_0 = arith.constant 0 : i32
    %c0_i32_1 = arith.constant 0 : i32
    return %arg0, %c0_i32, %c0_i32_0 : i32, i32, i32
  }
}

module attributes {stable_mosaic.version = 11 : i64} {
  func.func @_linear_kernel(%arg0: i32, %arg1: memref<2x2x128xbf16, #tpu.memory_space<vmem>>, %arg2: memref<1x2x128xbf16, #tpu.memory_space<vmem>>, %arg3: memref<1x1xf32, #tpu.memory_space<vmem>>, %arg4: memref<2x1xf32, #tpu.memory_space<vmem>>) attributes {dimension_semantics = [#tpu.dimension_semantics<arbitrary>], iteration_bounds = array<i64: 1>, scalar_prefetch = 0 : i64, scratch_operands = 0 : i64, tpu.core_type = #tpu.core_type<tc>, window_params = [{pipeline_mode = #tpu.pipeline_mode<synchronous>, transform_indices = @transform_0, window_bounds = array<i64: 2, 2, 128>}, {pipeline_mode = #tpu.pipeline_mode<synchronous>, transform_indices = @transform_1, window_bounds = array<i64: 1, 2, 128>}, {pipeline_mode = #tpu.pipeline_mode<synchronous>, transform_indices = @transform_2, window_bounds = array<i64: 1, 1>}, {pipeline_mode = #tpu.pipeline_mode<synchronous>, transform_indices = @transform_3, window_bounds = array<i64: 2, 1>}]} {
    %c0 = arith.constant 0 : index
    %c0_0 = arith.constant 0 : index
    %c0_1 = arith.constant 0 : index
    %0 = vector.load %arg1[%c0, %c0_0, %c0_1] : memref<2x2x128xbf16, #tpu.memory_space<vmem>>, vector<2x2x128xbf16>
    %1 = arith.extf %0 : vector<2x2x128xbf16> to vector<2x2x128xf32>
    %c0_2 = arith.constant 0 : index
    %c0_3 = arith.constant 0 : index
    %c0_4 = arith.constant 0 : index
    %2 = vector.load %arg2[%c0_2, %c0_3, %c0_4] : memref<1x2x128xbf16, #tpu.memory_space<vmem>>, vector<1x2x128xbf16>
    %3 = vector.shape_cast %2 : vector<1x2x128xbf16> to vector<2x128xbf16>
    %4 = arith.extf %3 : vector<2x128xbf16> to vector<2x128xf32>
    %5 = vector.shape_cast %4 : vector<2x128xf32> to vector<1x2x128xf32>
    %6 = vector.broadcast %5 : vector<1x2x128xf32> to vector<2x2x128xf32>
    %7 = arith.mulf %1, %6 : vector<2x2x128xf32>
    %cst = arith.constant dense<0.000000e+00> : vector<2x128xf32>
    %8 = vector.multi_reduction <add>, %7, %cst [1] : vector<2x2x128xf32> to vector<2x128xf32>
    %cst_5 = arith.constant dense<0.000000e+00> : vector<2xf32>
    %9 = vector.multi_reduction <add>, %8, %cst_5 [1] : vector<2x128xf32> to vector<2xf32>
    %10 = vector.shape_cast %9 : vector<2xf32> to vector<2x1xf32>
    %c0_6 = arith.constant 0 : index
    %c0_7 = arith.constant 0 : index
    %11 = vector.load %arg3[%c0_6, %c0_7] : memref<1x1xf32, #tpu.memory_space<vmem>>, vector<1x1xf32>
    %12 = vector.broadcast %11 : vector<1x1xf32> to vector<2x1xf32>
    %13 = arith.addf %10, %12 : vector<2x1xf32>
    %cst_8 = arith.constant 0.000000e+00 : f32
    %14 = vector.broadcast %cst_8 : f32 to vector<2x1xf32>
    %15 = arith.cmpf ogt, %13, %14 : vector<2x1xf32>
    %cst_9 = arith.constant 1.500000e-01 : f32
    %16 = vector.broadcast %cst_9 : f32 to vector<2x1xf32>
    %17 = arith.mulf %16, %13 : vector<2x1xf32>
    %18 = arith.select %15, %13, %17 : vector<2x1xi1>, vector<2x1xf32>
    %c0_10 = arith.constant 0 : index
    %c0_11 = arith.constant 0 : index
    %19 = vector.load %arg4[%c0_10, %c0_11] : memref<2x1xf32, #tpu.memory_space<vmem>>, vector<2x1xf32>
    tpu.vector_store %arg4[%c0_10, %c0_11], %18 {strides = array<i32>} : memref<2x1xf32, #tpu.memory_space<vmem>>, vector<2x1xf32>,
    return
  }
  func.func @transform_0(%arg0: i32) -> (i32, i32, i32) {
    %c0_i32 = arith.constant 0 : i32
    %c0_i32_0 = arith.constant 0 : i32
    %c0_i32_1 = arith.constant 0 : i32
    %c0_i32_2 = arith.constant 0 : i32
    return %c0_i32, %c0_i32_0, %c0_i32_1 : i32, i32, i32
  }
  func.func @transform_1(%arg0: i32) -> (i32, i32, i32) {
    %c0_i32 = arith.constant 0 : i32
    %c0_i32_0 = arith.constant 0 : i32
    %c0_i32_1 = arith.constant 0 : i32
    %c0_i32_2 = arith.constant 0 : i32
    return %c0_i32, %c0_i32_0, %c0_i32_1 : i32, i32, i32
  }
  func.func @transform_2(%arg0: i32) -> (i32, i32) {
    %c0_i32 = arith.constant 0 : i32
    %c0_i32_0 = arith.constant 0 : i32
    %c0_i32_1 = arith.constant 0 : i32
    return %c0_i32, %c0_i32_0 : i32, i32
  }
  func.func @transform_3(%arg0: i32) -> (i32, i32) {
    %c0_i32 = arith.constant 0 : i32
    %c0_i32_0 = arith.constant 0 : i32
    %c0_i32_1 = arith.constant 0 : i32
    return %c0_i32, %c0_i32_0 : i32, i32
  }
}

</mosaic_0001>

<bundles_post_ra>
// kernel: _forward.5
= control target key start
LH: loop header
LB: loop body
LE: loop exit
PB: predicated region body
PF: predicated region fallthrough
CT: control target
= control target key end

     0   :  { %s1649_s15 = smov 0   ;;  %s1651_s16 = smov 0   ;;  %s2196_s0 = inlined_call_operand.vmem [shape: bf16[2,256,27], index: 0, kind: input, shape index: {}]   ;;  %s2197_s1 = inlined_call_operand.vmem [shape: bf16[2,256,5], index: 1, kind: input, shape index: {}]   ;;  %s2198_s2 = inlined_call_operand.vmem [shape: bf16[27,16], index: 2, kind: input, shape index: {}]   ;;  %s2199_s3 = inlined_call_operand.vmem [shape: f32[1,16], index: 3, kind: input, shape index: {}]   ;;  %s2200_s4 = inlined_call_operand.vmem [shape: bf16[2,256,13], index: 4, kind: output, shape index: {}]  }
   0x1   :  { %s1653_s17 = smov 0  }
   0x2 LB: > { %s26_s18 = sadd.s32 1, %s1615_s16  ;;  %p1365_p0 = scmp.ge.s32.totalorder %s1619_s17, 1  ;;  %s1619_s17 = sphi %s1653_s17, %s14_s17   ;;  %s1615_s16 = sphi %s1651_s16, %s2202_s16   ;;  %s1611_s15 = sphi %s1649_s15, %s2201_s15  }
   0x3   : > { %p28_p1 = scmp.ge.s32.totalorder %s26_s18, 2  ;;  %p200_p2 = scmp.lt.s32.totalorder %s1619_s17, 3 }
   0x5   : > { %s2204_s18 = smov (%p28_p1, %s26_s18), 0  ;;  %p201_p3 = pnand %p1365_p0, %p200_p2 }
   0x6   : > { %p244_p4 = scmp.lt.s32.totalorder (!%p201_p3), %s1611_s15, 1  ;;  %s1622_s6 = smov (!%p201_p3), 8  }
   0x7   : > { %204 = sbr.rel (%p201_p3) target bundleno = 372 (0x174), region = 36  ;;  %s1623_s9 = smov (!%p201_p3), 120  }
   0xc   : > { %v1442_v0 = vld [vmem:[%s2198_s2 + $0x8] sm:$0xf]  ;;  %v1546_v1 = vld [vmem:[%s2198_s2 + $0x8] sm:$0x30]  ;;  %vm454_vm0 = vcmask 1044480   ;;  %vm455_vm1 = vcmask 1045504  }
   0xd   : > { %v1443_v2 = vor.u32 %v1546_v1, %v1442_v0  ;;  %v1621_v3 = vmov 65535   ;;  %s2206_s15 = smov (!%p244_p4, %s1611_s15), 1  ;;  %v1545_v7 = vld [vmem:[%s2198_s2] sm:$0xff]  ;;  %vm405_vm2 = vcmask 220160   ;;  %vm1062_vm10 = vcmask 64512  }
   0xe   : > { %v456_v4 = vsel %vm454_vm0, 4294967295, %v1621_v3  ;;  %s1673_s23 = sshll.u32 %s2206_s15, 7  ;;  %v1751_v37 = vld [vmem:[%s2199_s3] ss:$0 sm:$0xff]  ;;  %vm1223_vm12 = vcmask 101376  }
   0xf   : > { %v457_v5 = vsel %vm455_vm1, %v456_v4, 0  ;;  %s1682_s28 = scalar_lea.vmem %s2196_s0, %s1673_s23  ;;  %s1700_s5 = scalar_lea.vmem %s2197_s1, %s1673_s23 }
  0x10   : > { %v459_v6 = vand.u32 %v1443_v2, %v457_v5  ;;  %v1529_v8 = vld [vmem:[%s1682_s28] sm:$0xff]  ;;  %v1530_v12 = vld [vmem:[%s1682_s28 + $0x8] sm:$0xff]  ;;  %v1549_v18 = vld [vmem:[%s1700_s5 + $0x10] sm:$0xff]  ;;  %s1978_s12 = scalar_lea.vmem %s2200_s4, %s1673_s23 }
  0x11   : > { %v1533_v9 = vld [vmem:[%s1682_s28 + $0x20] sm:$0xff]  ;;  %v1534_v13 = vld [vmem:[%s1682_s28 + $0x28] sm:$0xff]  ;;  %1034 = vrot.lane.b32.xlu1 %v1549_v18, %s1622_s6  ;;  %v1550_v19 = vld [vmem:[%s1700_s5 + $0x18] sm:$0xff] }
  0x12   : > { %467 = vmatpush.bf16.msra.mxu0 %v459_v6  ;;  %1563 = vmatpush.bf16.msra.mxu1 %v459_v6  ;;  %v1537_v10 = vld [vmem:[%s1682_s28 + $0x40] sm:$0xff]  ;;  %v1542_v14 = vld [vmem:[%s1682_s28 + $0x68] sm:$0xff]  ;;  %v1531_v22 = vld [vmem:[%s1682_s28 + $0x10] sm:$0xff] }
  0x13   : > { %1564 = vmatpush.bf16.msra.mxu2 %v459_v6  ;;  %1565 = vmatpush.bf16.msra.mxu3 %v459_v6  ;;  %v1541_v11 = vld [vmem:[%s1682_s28 + $0x60] sm:$0xff]  ;;  %v1538_v15 = vld [vmem:[%s1682_s28 + $0x48] sm:$0xff]  ;;  %v1535_v23 = vld [vmem:[%s1682_s28 + $0x30] sm:$0xff] }
  0x14   : > { %v1547_v16 = vld [vmem:[%s1700_s5] sm:$0xff]  ;;  %v1548_v17 = vld [vmem:[%s1700_s5 + $0x8] sm:$0xff]  ;;  %v1539_v24 = vld [vmem:[%s1682_s28 + $0x50] sm:$0xff] }
  0x15   : > { %1030 = vrot.lane.b32.xlu2 %v1547_v16, %s1622_s6  ;;  %1032 = vrot.lane.b32.xlu0 %v1548_v17, %s1622_s6  ;;  %v1551_v20 = vld [vmem:[%s1700_s5 + $0x20] sm:$0xff]  ;;  %v1552_v21 = vld [vmem:[%s1700_s5 + $0x28] sm:$0xff] }
  0x16   : > { %468 = vmatpush.bf16.msra.mxu0 %v1545_v7  ;;  %1566 = vmatpush.bf16.msra.mxu1 %v1545_v7  ;;  %v1543_v25 = vld [vmem:[%s1682_s28 + $0x70] sm:$0xff]  ;;  %v1554_v27 = vld [vmem:[%s1700_s5 + $0x38] sm:$0xff]  ;;  %v1555_v28 = vld [vmem:[%s1700_s5 + $0x40] sm:$0xff] }
  0x17   : > { %1567 = vmatpush.bf16.msra.mxu2 %v1545_v7  ;;  %1568 = vmatpush.bf16.msra.mxu3 %v1545_v7  ;;  %v1553_v26 = vld [vmem:[%s1700_s5 + $0x30] sm:$0xff]  ;;  %v1556_v29 = vld [vmem:[%s1700_s5 + $0x48] sm:$0xff]  ;;  %v1532_v31 = vld [vmem:[%s1682_s28 + $0x18] sm:$0xff] }
  0x18   : > { %v1557_v30 = vld [vmem:[%s1700_s5 + $0x50] sm:$0xff]  ;;  %v1536_v32 = vld [vmem:[%s1682_s28 + $0x38] sm:$0xff]  ;;  %v1559_v35 = vld [vmem:[%s1700_s5 + $0x60] sm:$0xff] }
  0x19   : > { %1444 = vmatmul.msk.bf16.vlgmr.msra.gmra.mxu0 %vm405_vm2, %v1529_v8  ;;  %1448 = vmatmul.msk.bf16.vlgmr.msra.gmra.mxu1 %vm405_vm2, %v1533_v9  ;;  %v1540_v33 = vld [vmem:[%s1682_s28 + $0x58] sm:$0xff] }
  0x1a   : > { %1452 = vmatmul.msk.bf16.vlgmr.msra.gmra.mxu2 %vm405_vm2, %v1537_v10  ;;  %1456 = vmatmul.msk.bf16.vlgmr.msra.gmra.mxu3 %vm405_vm2, %v1541_v11  ;;  %v1544_v34 = vld [vmem:[%s1682_s28 + $0x78] sm:$0xff] }
  0x1b   : > { %1040 = vrot.lane.b32.xlu1 %v1552_v21, %s1622_s6  ;;  %v1558_v36 = vld [vmem:[%s1700_s5 + $0x58] sm:$0xff] }
  0x1d   : > { %1036 = vrot.lane.b32.xlu2 %v1550_v19, %s1622_s6  ;;  %1038 = vrot.lane.b32.xlu0 %v1551_v20, %s1622_s6 }
  0x23   : > { %1046 = vrot.lane.b32.xlu1 %v1555_v28, %s1622_s6 }
  0x25   : > { %1042 = vrot.lane.b32.xlu2 %v1553_v26, %s1622_s6  ;;  %1044 = vrot.lane.b32.xlu0 %v1554_v27, %s1622_s6 }
  0x29   : > { %1445 = vmatmul.msk.bf16.gmra.mxu0 %vm405_vm2, %v1530_v12  ;;  %1449 = vmatmul.msk.bf16.gmra.mxu1 %vm405_vm2, %v1534_v13 }
  0x2a   : > { %1457 = vmatmul.msk.bf16.gmra.mxu3 %vm405_vm2, %v1542_v14  ;;  %1453 = vmatmul.msk.bf16.gmra.mxu2 %vm405_vm2, %v1538_v15 }
  0x2b   : > { %1052 = vrot.lane.b32.xlu1 %v1558_v36, %s1622_s6 }
  0x2d   : > { %1048 = vrot.lane.b32.xlu2 %v1556_v29, %s1622_s6  ;;  %1050 = vrot.lane.b32.xlu0 %v1557_v30, %s1622_s6 }
  0x35   : > { %1054 = vrot.lane.b32.xlu2 %v1559_v35, %s1622_s6 }
  0x39   : > { %1446 = vmatmul.msk.bf16.gmra.mxu0 %vm405_vm2, %v1531_v22  ;;  %1450 = vmatmul.msk.bf16.gmra.mxu1 %vm405_vm2, %v1535_v23 }
  0x3a   : > { %1454 = vmatmul.msk.bf16.gmra.mxu2 %vm405_vm2, %v1539_v24  ;;  %1458 = vmatmul.msk.bf16.gmra.mxu3 %vm405_vm2, %v1543_v25 }
  0x49   : > { %1447 = vmatmul.msk.bf16.gmra.mxu0 %vm405_vm2, %v1532_v31  ;;  %1451 = vmatmul.msk.bf16.gmra.mxu1 %vm405_vm2, %v1536_v32 }
  0x4a   : > { %1455 = vmatmul.msk.bf16.gmra.mxu2 %vm405_vm2, %v1540_v33  ;;  %1459 = vmatmul.msk.bf16.gmra.mxu3 %vm405_vm2, %v1544_v34 }
  0x6f   : > { %v1846_v12 = vpop.permute.xlu2 %1030 }
  0x77   : > { %v1865_v20 = vpop.permute.xlu2 %1036 }
  0x7f   : > { %v1885_v30 = vpop.permute.xlu2 %1042 }
  0x87   : > { %v1899_v33 = vpop.permute.xlu0 %1032 }
  0x96   : > { %v470_v38 = vpop.f32.mrf.mxu0  ;;  %v490_v39 = vpop.f32.mrf.mxu1 }
  0x97   : > { %v1754_v40 = vadd.f32 %v1751_v37, %v470_v38  ;;  %v1757_v41 = vadd.f32 %v1751_v37, %v490_v39 }
  0x99   : > { %694 = vrot.lane.b32.xlu2 %v1757_v41, %s1623_s9  ;;  %678 = vrot.lane.b32.xlu0 %v1754_v40, %s1623_s9  ;;  %vm550_vm6 = vcmp.gt.f32.partialorder %v1754_v40, 0.0  ;;  %vm558_vm8 = vcmp.gt.f32.partialorder %v1757_v41, 0.0 }
  0x9d   : > { %v510_v42 = vpop.f32.mrf.mxu2  ;;  %v530_v43 = vpop.f32.mrf.mxu3 }
  0x9e   : > { %v1764_v44 = vadd.f32 %v1751_v37, %v510_v42  ;;  %v472_v45 = vpop.f32.mrf.mxu0  ;;  %v1767_v46 = vadd.f32 %v1751_v37, %v530_v43  ;;  %v492_v47 = vpop.f32.mrf.mxu1 }
  0x9f   : > { %v1780_v52 = vadd.f32 %v1751_v37, %v472_v45  ;;  %v1795_v59 = vadd.f32 %v1751_v37, %v492_v47  ;;  %v1907_v42 = vpop.permute.xlu2 %1048  ;;  %v1918_v45 = vpop.permute.xlu1 %1034 }
  0xa0   : > { %710 = vrot.lane.b32.xlu1 %v1764_v44, %s1623_s9  ;;  %vm566_vm5 = vcmp.gt.f32.partialorder %v1764_v44, 0.0  ;;  %vm574_vm7 = vcmp.gt.f32.partialorder %v1767_v46, 0.0 }
  0xa1   : > { %726 = vrot.lane.b32.xlu0 %v1767_v46, %s1623_s9  ;;  %vm551_vm11 = vcmp.gt.f32.partialorder %v1780_v52, 0.0  ;;  %vm559_vm13 = vcmp.gt.f32.partialorder %v1795_v59, 0.0 }
  0xa5   : > { %v512_v48 = vpop.f32.mrf.mxu2  ;;  %v532_v49 = vpop.f32.mrf.mxu3 }
  0xa6   : > { %v1774_v50 = vadd.f32 %v1751_v37, %v512_v48  ;;  %v1777_v51 = vadd.f32 %v1751_v37, %v532_v49  ;;  %v475_v53 = vpop.f32.mrf.mxu0  ;;  %v495_v54 = vpop.f32.mrf.mxu1  ;;  %v1560_v48 = vld [vmem:[%s1700_s5 + $0x68] sm:$0xff] }
  0xa7   : > { %v1789_v56 = vadd.f32 %v1751_v37, %v475_v53  ;;  %v1807_v63 = vadd.f32 %v1751_v37, %v495_v54  ;;  %v1921_v49 = vpop.permute.xlu0 %1038  ;;  %v1562_v54 = vld [vmem:[%s1700_s5 + $0x78] sm:$0xff] }
  0xa8   : > { %728 = vrot.lane.b32.xlu1 %v1777_v51, %s1623_s9  ;;  %712 = vrot.lane.b32.xlu2 %v1774_v50, %s1623_s9  ;;  %vm567_vm4 = vcmp.gt.f32.partialorder %v1774_v50, 0.0  ;;  %vm575_vm9 = vcmp.gt.f32.partialorder %v1777_v51, 0.0 }
  0xa9   : > { %680 = vrot.lane.b32.xlu0 %v1780_v52, %s1623_s9  ;;  %vm560_vm0 = vcmp.gt.f32.partialorder %v1807_v63, 0.0  ;;  %vm552_vm2 = vcmp.gt.f32.partialorder %v1789_v56, 0.0 }
  0xad   : > { %v535_v55 = vpop.f32.mrf.mxu3  ;;  %v515_v58 = vpop.f32.mrf.mxu2 }
  0xae   : > { %v1792_v57 = vadd.f32 %v1751_v37, %v535_v55  ;;  %v477_v60 = vpop.f32.mrf.mxu0  ;;  %v497_v61 = vpop.f32.mrf.mxu1  ;;  %v1804_v62 = vadd.f32 %v1751_v37, %v515_v58  ;;  %v1561_v58 = vld [vmem:[%s1700_s5 + $0x70] sm:$0xff] }
  0xaf   : > { %v1810_v0 = vadd.f32 %v1751_v37, %v497_v61  ;;  %v1822_v5 = vadd.f32 %v1751_v37, %v477_v60  ;;  %v1927_v55 = vpop.permute.xlu2 %1054  ;;  %v1934_v60 = vpop.permute.xlu1 %1040 }
  0xb0   : > { %730 = vrot.lane.b32.xlu2 %v1792_v57, %s1623_s9  ;;  %682 = vrot.lane.b32.xlu1 %v1789_v56, %s1623_s9  ;;  %v1936_v61 = vpop.permute.xlu0 %1044  ;;  %vm576_vm3 = vcmp.gt.f32.partialorder %v1792_v57, 0.0 }
  0xb1   : > { %696 = vrot.lane.b32.xlu0 %v1795_v59, %s1623_s9  ;;  %vm561_vm14 = vcmp.gt.f32.partialorder %v1810_v0, 0.0 }
  0xb5   : > { %v517_v1 = vpop.f32.mrf.mxu2  ;;  %v537_v3 = vpop.f32.mrf.mxu3 }
  0xb6   : > { %v480_v2 = vpop.f32.mrf.mxu0  ;;  %v1825_v6 = vadd.f32 %v1751_v37, %v537_v3  ;;  %v500_v8 = vpop.f32.mrf.mxu1  ;;  %v1840_v11 = vadd.f32 %v1751_v37, %v517_v1 }
  0xb7   : > { %v1819_v4 = vadd.f32 %v1751_v37, %v480_v2  ;;  %v1837_v10 = vadd.f32 %v1751_v37, %v500_v8 }
  0xb8   : > { %700 = vrot.lane.b32.xlu2 %v1810_v0, %s1623_s9  ;;  %698 = vrot.lane.b32.xlu1 %v1807_v63, %s1623_s9  ;;  %v1941_v2 = vpop.permute.xlu0 %1050 }
  0xb9   : > { %714 = vrot.lane.b32.xlu0 %v1804_v62, %s1623_s9  ;;  %vm554_vm15 = vcmp.gt.f32.partialorder %v1819_v4, 0.0 }
  0xbd   : > { %v520_v7 = vpop.f32.mrf.mxu2  ;;  %v540_v13 = vpop.f32.mrf.mxu3 }
  0xbe   : > { %v1834_v9 = vadd.f32 %v1751_v37, %v520_v7  ;;  %v482_v14 = vpop.f32.mrf.mxu0  ;;  %v1851_v16 = vadd.f32 %v1751_v37, %v540_v13  ;;  %v502_v19 = vpop.f32.mrf.mxu1  ;;  %v608_v7 = vmul.f32 0.15, %v1792_v57  ;;  %v599_v13 = vmul.f32 0.15, %v1774_v50 }
  0xbf   : > { %v1854_v17 = vadd.f32 %v1751_v37, %v482_v14  ;;  %v1871_v24 = vadd.f32 %v1751_v37, %v502_v19 }
  0xc0   : > { %686 = vrot.lane.b32.xlu2 %v1819_v4, %s1623_s9  ;;  %684 = vrot.lane.b32.xlu1 %v1822_v5, %s1623_s9  ;;  %v640_v14 = vsel %vm576_vm3, %v1792_v57, %v608_v7  ;;  %v606_v57 = vmul.f32 0.15, %v1767_v46  ;;  %v607_v7 = vmul.f32 0.15, %v1777_v51  ;;  %vm568_vm3 = vcmp.gt.f32.partialorder %v1804_v62, 0.0 }
  0xc1   : > { %732 = vrot.lane.b32.xlu0 %v1825_v6, %s1623_s9  ;;  %vm555_vm1 = vcmp.gt.f32.partialorder %v1854_v17, 0.0 }
  0xc5   : > { %v522_v15 = vpop.f32.mrf.mxu2  ;;  %v542_v21 = vpop.f32.mrf.mxu3 }
  0xc6   : > { %v1857_v18 = vadd.f32 %v1751_v37, %v522_v15  ;;  %v485_v22 = vpop.f32.mrf.mxu0  ;;  %v1874_v25 = vadd.f32 %v1751_v37, %v542_v21  ;;  %v505_v27 = vpop.f32.mrf.mxu1 }
  0xc7   : > { %v1868_v23 = vadd.f32 %v1751_v37, %v485_v22  ;;  %v1883_v28 = vadd.f32 %v1751_v37, %v505_v27  ;;  %v631_v22 = vsel %vm567_vm4, %v1774_v50, %v599_v13  ;;  %v583_v13 = vmul.f32 0.15, %v1780_v52 }
  0xc8   : > { %718 = vrot.lane.b32.xlu2 %v1834_v9, %s1623_s9  ;;  %716 = vrot.lane.b32.xlu1 %v1840_v11, %s1623_s9  ;;  %vm553_vm4 = vcmp.gt.f32.partialorder %v1822_v5, 0.0 }
  0xc9   : > { %702 = vrot.lane.b32.xlu0 %v1837_v10, %s1623_s9 }
  0xcd   : > { %v525_v26 = vpop.f32.mrf.mxu2  ;;  %v545_v29 = vpop.f32.mrf.mxu3 }
  0xce   : > { %v1888_v31 = vadd.f32 %v1751_v37, %v545_v29  ;;  %v1891_v32 = vadd.f32 %v1751_v37, %v525_v26  ;;  %v487_v34 = vpop.f32.mrf.mxu0  ;;  %v507_v36 = vpop.f32.mrf.mxu1  ;;  %v598_v26 = vmul.f32 0.15, %v1764_v44  ;;  %v582_v29 = vmul.f32 0.15, %v1754_v40 }
  0xcf   : > { %v1902_v38 = vadd.f32 %v1751_v37, %v487_v34  ;;  %v1910_v43 = vadd.f32 %v1751_v37, %v507_v36 }
  0xd0   : > { %688 = vrot.lane.b32.xlu2 %v1854_v17, %s1623_s9  ;;  %734 = vrot.lane.b32.xlu1 %v1851_v16, %s1623_s9 }
  0xd1   : > { %720 = vrot.lane.b32.xlu0 %v1857_v18, %s1623_s9 }
  0xd5   : > { %v527_v35 = vpop.f32.mrf.mxu2  ;;  %v547_v47 = vpop.f32.mrf.mxu3 }
  0xd6   : > { %v1905_v39 = vadd.f32 %v1751_v37, %v527_v35  ;;  %v1924_v53 = vadd.f32 %v1751_v37, %v547_v47  ;;  %v1047_v37 = vpop.permute.xlu1 %1046  ;;  %v630_v35 = vsel %vm566_vm5, %v1764_v44, %v598_v26  ;;  %v638_v44 = vsel %vm574_vm7, %v1767_v46, %v606_v57 }
  0xd7   : > { %vm577_vm5 = vcmp.gt.f32.partialorder %v1825_v6, 0.0  ;;  %vm570_vm7 = vcmp.gt.f32.partialorder %v1834_v9, 0.0 }
  0xd8   : > { %736 = vrot.lane.b32.xlu2 %v1874_v25, %s1623_s9  ;;  %704 = vrot.lane.b32.xlu1 %v1871_v24, %s1623_s9 }
  0xd9   : > { %690 = vrot.lane.b32.xlu0 %v1868_v23, %s1623_s9 }
  0xde   : > { %v1945_v8 = vpop.permute.xlu1 %1052 }
  0xe0   : > { %706 = vrot.lane.b32.xlu2 %v1883_v28, %s1623_s9  ;;  %722 = vrot.lane.b32.xlu1 %v1891_v32, %s1623_s9 }
  0xe1   : > { %738 = vrot.lane.b32.xlu0 %v1888_v31, %s1623_s9 }
  0xe8   : > { %724 = vrot.lane.b32.xlu2 %v1905_v39, %s1623_s9  ;;  %692 = vrot.lane.b32.xlu1 %v1902_v38, %s1623_s9 }
  0xe9   : > { %708 = vrot.lane.b32.xlu0 %v1910_v43, %s1623_s9 }
  0xf0   : > { %740 = vrot.lane.b32.xlu1 %v1924_v53, %s1623_s9  ;;  %1060 = vrot.lane.b32.xlu2 %v1562_v54, %s1622_s6  ;;  %v590_v54 = vmul.f32 0.15, %v1757_v41 }
  0xf1   : > { %1056 = vrot.lane.b32.xlu0 %v1560_v48, %s1622_s6 }
  0xf3   : > { %v1939_v1 = vpop.permute.xlu2 %694 }
  0xf8   : > { %1058 = vrot.lane.b32.xlu1 %v1561_v58, %s1622_s6 }
 0x102   : > { %v713_v3 = vpop.permute.xlu2 %712 }
 0x103   : > { %v791_v27 = vadd.f32 %v713_v3, %v631_v22  ;;  %v614_v3 = vsel %vm550_vm6, %v1754_v40, %v582_v29  ;;  %v639_v40 = vsel %vm575_vm9, %v1777_v51, %v607_v7  ;;  %v591_v51 = vmul.f32 0.15, %v1795_v59 }
 0x104   : > { %vm569_vm6 = vcmp.gt.f32.partialorder %v1840_v11, 0.0  ;;  %vm578_vm9 = vcmp.gt.f32.partialorder %v1851_v16, 0.0 }
 0x105   : > { %v823_v47 = vpack.c.bf16 %v791_v27, %v791_v27 }
 0x10a   : > { %v731_v15 = vpop.permute.xlu2 %730 }
 0x10b   : > { %v1950_v19 = vadd.f32 %v731_v15, %v640_v14  ;;  %v679_v21 = vpop.permute.xlu0 %678  ;;  %v919_v14 = vunpack.c.l.b16 %v823_v47 }
 0x10c   : > { %v774_v26 = vadd.f32 %v679_v21, %v614_v3 }
 0x112   : > { %v711_v34 = vpop.permute.xlu1 %710  ;;  %v1957_v36 = vpop.permute.xlu2 %700 }
 0x113   : > { %v790_v48 = vadd.f32 %v711_v34, %v630_v35  ;;  %v727_v50 = vpop.permute.xlu0 %726  ;;  %v622_v34 = vsel %vm558_vm8, %v1757_v41, %v590_v54  ;;  %v593_v54 = vmul.f32 0.15, %v1810_v0  ;;  %vm579_vm8 = vcmp.gt.f32.partialorder %v1874_v25, 0.0 }
 0x114   : > { %v798_v22 = vadd.f32 %v727_v50, %v638_v44 }
 0x115   : > { %v822_v58 = vpack.c.bf16 %v790_v48, %v790_v48  ;;  %v615_v48 = vsel %vm551_vm11, %v1780_v52, %v583_v13  ;;  %v782_v13 = vadd.f32 %v1939_v1, %v622_v34  ;;  %v623_v1 = vsel %vm559_vm13, %v1795_v59, %v591_v51 }
 0x116   : > { %v830_v57 = vpack.c.bf16 %v798_v22, %v798_v22  ;;  %v586_v22 = vmul.f32 0.15, %v1819_v4  ;;  %v592_v34 = vmul.f32 0.15, %v1807_v63  ;;  %vm571_vm11 = vcmp.gt.f32.partialorder %v1857_v18, 0.0 }
 0x117   : > { %v918_v15 = vunpack.c.l.b16 %v822_v58  ;;  %v806_v58 = vpack.c.bf16 %v774_v26, %v774_v26  ;;  %vm562_vm13 = vcmp.gt.f32.partialorder %v1837_v10, 0.0 }
 0x119   : > { %v942_v27 = vpack.c.b16 %v919_v14, %v918_v15  ;;  %v926_v14 = vunpack.c.l.b16 %v830_v57  ;;  %v902_v26 = vunpack.c.l.b16 %v806_v58  ;;  %v814_v57 = vpack.c.bf16 %v782_v13, %v782_v13 }
 0x11a   : > { %v729_v46 = vpop.permute.xlu1 %728  ;;  %v687_v29 = vpop.permute.xlu2 %686  ;;  %v618_v58 = vsel %vm554_vm15, %v1819_v4, %v586_v22  ;;  %vm573_vm15 = vcmp.gt.f32.partialorder %v1905_v39, 0.0 }
 0x11b   : > { %v1089_v35 = vsel %vm1062_vm10, %v942_v27, %v1047_v37  ;;  %v799_v47 = vadd.f32 %v729_v46, %v639_v40  ;;  %v681_v50 = vpop.permute.xlu0 %680 }
 0x11c   : > { %v1143_v21 = vunpack.c.l.b16 %v1089_v35  ;;  %v1144_v3 = vunpack.c.h.b16 %v1089_v35  ;;  %v775_v44 = vadd.f32 %v681_v50, %v615_v48  ;;  %v625_v48 = vsel %vm561_vm14, %v1810_v0, %v593_v54 }
 0x11d   : > { %v831_v41 = vpack.c.bf16 %v799_v47, %v799_v47  ;;  %v785_v51 = vadd.f32 %v1957_v36, %v625_v48  ;;  %v587_v0 = vmul.f32 0.15, %v1854_v17  ;;  %vm563_vm14 = vcmp.gt.f32.partialorder %v1871_v24, 0.0 }
 0x11e   : > { %v1175_v37 = vpack.c.b16 %v1143_v21, %v1143_v21  ;;  %v1176_v52 = vpack.c.b16 %v1144_v3, %v1144_v3  ;;  %v807_v7 = vpack.c.bf16 %v775_v44, %v775_v44 }
 0x11f   : > { %v927_v15 = vunpack.c.l.b16 %v831_v41  ;;  %v817_v22 = vpack.c.bf16 %v785_v51, %v785_v51 }
 0x120   : > { %1240 = vst.msk [vmem:[%s1978_s12 + $0x40] sm:$0xf] %vm1223_vm12, %v1175_v37  ;;  %v903_v27 = vunpack.c.l.b16 %v807_v7  ;;  %v778_v7 = vadd.f32 %v687_v29, %v618_v58  ;;  %v624_v29 = vsel %vm560_vm0, %v1807_v63, %v592_v34  ;;  %v600_v34 = vmul.f32 0.15, %v1804_v62 }
 0x121   : > { %1241 = vst.msk [vmem:[%s1978_s12 + $0x44] sm:$0xf] %vm1223_vm12, %v1176_v52  ;;  %v946_v40 = vpack.c.b16 %v927_v15, %v926_v14  ;;  %v584_v15 = vmul.f32 0.15, %v1789_v56  ;;  %vm572_vm0 = vcmp.gt.f32.partialorder %v1891_v32, 0.0 }
 0x122   : > { %v934_v46 = vpack.c.b16 %v903_v27, %v902_v26  ;;  %v1991_v35 = vpop.permute.xlu2 %718  ;;  %v683_v47 = vpop.permute.xlu1 %682  ;;  %v810_v26 = vpack.c.bf16 %v778_v7, %v778_v7 }
 0x123   : > { %v1101_v50 = vsel %vm1062_vm10, %v946_v40, %v1927_v55  ;;  %v697_v21 = vpop.permute.xlu0 %696  ;;  %v619_v40 = vsel %vm555_vm1, %v1854_v17, %v587_v0  ;;  %v585_v17 = vmul.f32 0.15, %v1822_v5  ;;  %vm564_vm1 = vcmp.gt.f32.partialorder %v1883_v28, 0.0 }
 0x124   : > { %v1151_v3 = vunpack.c.l.b16 %v1101_v50  ;;  %v1152_v44 = vunpack.c.h.b16 %v1101_v50  ;;  %v1065_v41 = vsel %vm1062_vm10, %v934_v46, %v1846_v12  ;;  %v783_v59 = vadd.f32 %v697_v21, %v623_v1 }
 0x125   : > { %v1127_v37 = vunpack.c.l.b16 %v1065_v41  ;;  %v1128_v52 = vunpack.c.h.b16 %v1065_v41  ;;  %v910_v12 = vunpack.c.l.b16 %v814_v57  ;;  %v616_v57 = vsel %vm552_vm2, %v1789_v56, %v584_v15 }
 0x126   : > { %v1183_v54 = vpack.c.b16 %v1151_v3, %v1151_v3  ;;  %v1184_v55 = vpack.c.b16 %v1152_v44, %v1152_v44  ;;  %v815_v4 = vpack.c.bf16 %v783_v59, %v783_v59  ;;  %v913_v41 = vunpack.c.l.b16 %v817_v22 }
 0x127   : > { %v1159_v13 = vpack.c.b16 %v1127_v37, %v1127_v37  ;;  %v1160_v14 = vpack.c.b16 %v1128_v52, %v1128_v52  ;;  %v906_v59 = vunpack.c.l.b16 %v810_v26  ;;  %v776_v51 = vadd.f32 %v683_v47, %v616_v57 }
 0x128   : > { %1248 = vst.msk [vmem:[%s1978_s12 + $0x60] sm:$0xf] %vm1223_vm12, %v1183_v54  ;;  %v911_v36 = vunpack.c.l.b16 %v815_v4  ;;  %v609_v37 = vmul.f32 0.15, %v1825_v6  ;;  %v617_v47 = vsel %vm553_vm4, %v1822_v5, %v585_v17  ;;  %v832_v5 = vpack.c.bf16 %v1950_v19, %v1950_v19 }
 0x129   : > { %1249 = vst.msk [vmem:[%s1978_s12 + $0x64] sm:$0xf] %vm1223_vm12, %v1184_v55  ;;  %v808_v4 = vpack.c.bf16 %v776_v51, %v776_v51  ;;  %v602_v19 = vmul.f32 0.15, %v1834_v9  ;;  %vm556_vm2 = vcmp.gt.f32.partialorder %v1868_v23, 0.0  ;;  %vm565_vm4 = vcmp.gt.f32.partialorder %v1910_v43, 0.0 }
 0x12a   : > { %1224 = vst.msk [vmem:[%s1978_s12] sm:$0xf] %vm1223_vm12, %v1159_v13  ;;  %v938_v27 = vpack.c.b16 %v911_v36, %v910_v12  ;;  %v689_v46 = vpop.permute.xlu2 %688  ;;  %v699_v1 = vpop.permute.xlu1 %698  ;;  %v632_v13 = vsel %vm568_vm3, %v1804_v62, %v600_v34  ;;  %vm557_vm3 = vcmp.gt.f32.partialorder %v1902_v38, 0.0 }
 0x12b   : > { %1225 = vst.msk [vmem:[%s1978_s12 + $0x4] sm:$0xf] %vm1223_vm12, %v1160_v14  ;;  %v779_v48 = vadd.f32 %v689_v46, %v619_v40  ;;  %v784_v50 = vadd.f32 %v699_v1, %v624_v29  ;;  %v715_v58 = vpop.permute.xlu0 %714  ;;  %v641_v29 = vsel %vm577_vm5, %v1825_v6, %v609_v37  ;;  %v904_v57 = vunpack.c.l.b16 %v808_v4 }
 0x12c   : > { %v1077_v63 = vsel %vm1062_vm10, %v938_v27, %v1921_v49  ;;  %v634_v4 = vsel %vm570_vm7, %v1834_v9, %v602_v19  ;;  %vm580_vm5 = vcmp.gt.f32.partialorder %v1888_v31, 0.0 }
 0x12d   : > { %v1135_v21 = vunpack.c.l.b16 %v1077_v63  ;;  %v1136_v3 = vunpack.c.h.b16 %v1077_v63  ;;  %v811_v44 = vpack.c.bf16 %v779_v48, %v779_v48  ;;  %v816_v56 = vpack.c.bf16 %v784_v50, %v784_v50 }
 0x12e   : > { %v792_v63 = vadd.f32 %v715_v58, %v632_v13  ;;  %v611_v58 = vmul.f32 0.15, %v1874_v25 }
 0x12f   : > { %v1167_v52 = vpack.c.b16 %v1135_v21, %v1135_v21  ;;  %v1168_v0 = vpack.c.b16 %v1136_v3, %v1136_v3  ;;  %v907_v49 = vunpack.c.l.b16 %v811_v44  ;;  %v912_v54 = vunpack.c.l.b16 %v816_v56 }
 0x130   : > { %v2051_v3 = vunpack.c.l.b16 %v832_v5  ;;  %v824_v51 = vpack.c.bf16 %v792_v63, %v792_v63 }
 0x131   : > { %1232 = vst.msk [vmem:[%s1978_s12 + $0x20] sm:$0xf] %vm1223_vm12, %v1167_v52  ;;  %v936_v55 = vpack.c.b16 %v907_v49, %v906_v59  ;;  %v939_v7 = vpack.c.b16 %v913_v41, %v912_v54 }
 0x132   : > { %1233 = vst.msk [vmem:[%s1978_s12 + $0x24] sm:$0xf] %vm1223_vm12, %v1168_v0  ;;  %v685_v14 = vpop.permute.xlu1 %684  ;;  %v737_v21 = vpop.permute.xlu2 %736 }
 0x133   : > { %v1071_v15 = vsel %vm1062_vm10, %v936_v55, %v1918_v45  ;;  %v1080_v12 = vsel %vm1062_vm10, %v939_v7, %v1934_v60  ;;  %v777_v36 = vadd.f32 %v685_v14, %v617_v47  ;;  %v733_v22 = vpop.permute.xlu0 %732  ;;  %v601_v45 = vmul.f32 0.15, %v1840_v11 }
 0x134   : > { %v1131_v26 = vunpack.c.l.b16 %v1071_v15  ;;  %v1132_v62 = vunpack.c.h.b16 %v1071_v15  ;;  %v1137_v27 = vunpack.c.l.b16 %v1080_v12  ;;  %v1138_v40 = vunpack.c.h.b16 %v1080_v12 }
 0x135   : > { %v809_v46 = vpack.c.bf16 %v777_v36, %v777_v36  ;;  %v801_v1 = vadd.f32 %v733_v22, %v641_v29  ;;  %v633_v41 = vsel %vm569_vm6, %v1840_v11, %v601_v45  ;;  %v610_v11 = vmul.f32 0.15, %v1851_v16 }
 0x136   : > { %v1163_v60 = vpack.c.b16 %v1131_v26, %v1131_v26  ;;  %v1164_v48 = vpack.c.b16 %v1132_v62, %v1132_v62  ;;  %v1169_v50 = vpack.c.b16 %v1137_v27, %v1137_v27  ;;  %v1170_v6 = vpack.c.b16 %v1138_v40, %v1138_v40 }
 0x137   : > { %v905_v34 = vunpack.c.l.b16 %v809_v46  ;;  %v833_v17 = vpack.c.bf16 %v801_v1, %v801_v1  ;;  %v920_v14 = vunpack.c.l.b16 %v824_v51  ;;  %v603_v36 = vmul.f32 0.15, %v1857_v18 }
 0x138   : > { %1228 = vst.msk [vmem:[%s1978_s12 + $0x10] sm:$0xf] %vm1223_vm12, %v1163_v60  ;;  %v794_v29 = vadd.f32 %v1991_v35, %v634_v4  ;;  %v594_v22 = vmul.f32 0.15, %v1837_v10  ;;  %vm581_vm6 = vcmp.gt.f32.partialorder %v1924_v53, 0.0 }
 0x139   : > { %1229 = vst.msk [vmem:[%s1978_s12 + $0x14] sm:$0xf] %vm1223_vm12, %v1164_v48  ;;  %v935_v44 = vpack.c.b16 %v905_v34, %v904_v57  ;;  %v2056_v56 = vunpack.c.l.b16 %v833_v17  ;;  %v635_v5 = vsel %vm571_vm11, %v1857_v18, %v603_v36  ;;  %v588_v36 = vmul.f32 0.15, %v1868_v23 }
 0x13a   : > { %1234 = vst.msk [vmem:[%s1978_s12 + $0x28] sm:$0xf] %vm1223_vm12, %v1169_v50  ;;  %v717_v59 = vpop.permute.xlu1 %716  ;;  %v2088_v26 = vpop.permute.xlu2 %706  ;;  %v826_v1 = vpack.c.bf16 %v794_v29, %v794_v29  ;;  %v626_v48 = vsel %vm562_vm13, %v1837_v10, %v594_v22 }
 0x13b   : > { %1235 = vst.msk [vmem:[%s1978_s12 + $0x2c] sm:$0xf] %vm1223_vm12, %v1170_v6  ;;  %v1068_v37 = vsel %vm1062_vm10, %v935_v44, %v1899_v33  ;;  %v947_v52 = vpack.c.b16 %v2056_v56, %v2051_v3  ;;  %v793_v0 = vadd.f32 %v717_v59, %v633_v41  ;;  %v703_v49 = vpop.permute.xlu0 %702  ;;  %v643_v33 = vsel %vm579_vm8, %v1874_v25, %v611_v58 }
 0x13c   : > { %v1129_v54 = vunpack.c.l.b16 %v1068_v37  ;;  %v1130_v55 = vunpack.c.h.b16 %v1068_v37  ;;  %v803_v15 = vadd.f32 %v737_v21, %v643_v33  ;;  %v642_v25 = vsel %vm578_vm9, %v1851_v16, %v610_v11 }
 0x13d   : > { %v825_v7 = vpack.c.bf16 %v793_v0, %v793_v0  ;;  %v595_v16 = vmul.f32 0.15, %v1871_v24  ;;  %v786_v34 = vadd.f32 %v703_v49, %v626_v48  ;;  %v922_v18 = vunpack.c.l.b16 %v826_v1 }
 0x13e   : > { %v1161_v13 = vpack.c.b16 %v1129_v54, %v1129_v54  ;;  %v1162_v47 = vpack.c.b16 %v1130_v55, %v1130_v55  ;;  %v835_v27 = vpack.c.bf16 %v803_v15, %v803_v15  ;;  %v605_v58 = vmul.f32 0.15, %v1905_v39 }
 0x13f   : > { %v921_v12 = vunpack.c.l.b16 %v825_v7  ;;  %v818_v44 = vpack.c.bf16 %v786_v34, %v786_v34  ;;  %v627_v59 = vsel %vm563_vm14, %v1871_v24, %v595_v16  ;;  %v604_v24 = vmul.f32 0.15, %v1891_v32 }
 0x140   : > { %1226 = vst.msk [vmem:[%s1978_s12 + $0x8] sm:$0xf] %vm1223_vm12, %v1161_v13  ;;  %v637_v33 = vsel %vm573_vm15, %v1905_v39, %v605_v58  ;;  %v597_v48 = vmul.f32 0.15, %v1910_v43 }
 0x141   : > { %1227 = vst.msk [vmem:[%s1978_s12 + $0xc] sm:$0xf] %vm1223_vm12, %v1162_v47  ;;  %v943_v9 = vpack.c.b16 %v921_v12, %v920_v14  ;;  %v914_v4 = vunpack.c.l.b16 %v818_v44  ;;  %v596_v12 = vmul.f32 0.15, %v1883_v28  ;;  %v636_v39 = vsel %vm572_vm0, %v1891_v32, %v604_v24 }
 0x142   : > { %v735_v62 = vpop.permute.xlu1 %734  ;;  %v725_v49 = vpop.permute.xlu2 %724  ;;  %v589_v32 = vmul.f32 0.15, %v1902_v38 }
 0x143   : > { %v1092_v35 = vsel %vm1062_vm10, %v943_v9, %v1907_v42  ;;  %v802_v40 = vadd.f32 %v735_v62, %v642_v25  ;;  %v721_v46 = vpop.permute.xlu0 %720  ;;  %v2099_v42 = vunpack.c.l.b16 %v835_v27  ;;  %v797_v13 = vadd.f32 %v725_v49, %v637_v33 }
 0x144   : > { %v1145_v45 = vunpack.c.l.b16 %v1092_v35  ;;  %v1146_v57 = vunpack.c.h.b16 %v1092_v35  ;;  %v795_v60 = vadd.f32 %v721_v46, %v635_v5  ;;  %v620_v5 = vsel %vm556_vm2, %v1868_v23, %v588_v36 }
 0x145   : > { %v834_v50 = vpack.c.bf16 %v802_v40, %v802_v40  ;;  %v829_v9 = vpack.c.bf16 %v797_v13, %v797_v13  ;;  %v628_v40 = vsel %vm564_vm1, %v1883_v28, %v596_v12  ;;  %v612_v28 = vmul.f32 0.15, %v1888_v31 }
 0x146   : > { %v1177_v6 = vpack.c.b16 %v1145_v45, %v1145_v45  ;;  %v1178_v63 = vpack.c.b16 %v1146_v57, %v1146_v57  ;;  %v827_v17 = vpack.c.bf16 %v795_v60, %v795_v60  ;;  %v621_v16 = vsel %vm557_vm3, %v1902_v38, %v589_v32 }
 0x147   : > { %v2101_v21 = vunpack.c.l.b16 %v834_v50  ;;  %v925_v57 = vunpack.c.l.b16 %v829_v9  ;;  %v788_v50 = vadd.f32 %v2088_v26, %v628_v40  ;;  %v629_v26 = vsel %vm565_vm4, %v1910_v43, %v597_v48 }
 0x148   : > { %1242 = vst.msk [vmem:[%s1978_s12 + $0x48] sm:$0xf] %vm1223_vm12, %v1177_v6  ;;  %v923_v19 = vunpack.c.l.b16 %v827_v17  ;;  %v613_v49 = vmul.f32 0.15, %v1924_v53 }
 0x149   : > { %1243 = vst.msk [vmem:[%s1978_s12 + $0x4c] sm:$0xf] %vm1223_vm12, %v1178_v63  ;;  %v948_v10 = vpack.c.b16 %v2099_v42, %v2101_v21 }
 0x14a   : > { %v944_v41 = vpack.c.b16 %v923_v19, %v922_v18  ;;  %v705_v51 = vpop.permute.xlu1 %704  ;;  %v820_v19 = vpack.c.bf16 %v788_v50, %v788_v50  ;;  %v1061_v56 = vpop.permute.xlu2 %1060 }
 0x14b   : > { %v787_v37 = vadd.f32 %v705_v51, %v627_v59  ;;  %v691_v0 = vpop.permute.xlu0 %690  ;;  %v644_v59 = vsel %vm580_vm5, %v1888_v31, %v612_v28  ;;  %v645_v31 = vsel %vm581_vm6, %v1924_v53, %v613_v49 }
 0x14c   : > { %v1095_v54 = vsel %vm1062_vm10, %v944_v41, %v1941_v2  ;;  %v780_v60 = vadd.f32 %v691_v0, %v620_v5  ;;  %v916_v43 = vunpack.c.l.b16 %v820_v19 }
 0x14d   : > { %v1147_v55 = vunpack.c.l.b16 %v1095_v54  ;;  %v1148_v7 = vunpack.c.h.b16 %v1095_v54  ;;  %v819_v11 = vpack.c.bf16 %v787_v37, %v787_v37 }
 0x14e   : > { %v812_v63 = vpack.c.bf16 %v780_v60, %v780_v60 }
 0x14f   : > { %v1179_v47 = vpack.c.b16 %v1147_v55, %v1147_v55  ;;  %v1180_v14 = vpack.c.b16 %v1148_v7, %v1148_v7  ;;  %v915_v15 = vunpack.c.l.b16 %v819_v11 }
 0x150   : > { %v908_v54 = vunpack.c.l.b16 %v812_v63 }
 0x151   : > { %1244 = vst.msk [vmem:[%s1978_s12 + $0x50] sm:$0xf] %vm1223_vm12, %v1179_v47  ;;  %v940_v2 = vpack.c.b16 %v915_v15, %v914_v4 }
 0x152   : > { %1245 = vst.msk [vmem:[%s1978_s12 + $0x54] sm:$0xf] %vm1223_vm12, %v1180_v14  ;;  %v723_v29 = vpop.permute.xlu1 %722 }
 0x153   : > { %v1083_v22 = vsel %vm1062_vm10, %v940_v2, %v1885_v30  ;;  %v796_v25 = vadd.f32 %v723_v29, %v636_v39  ;;  %v739_v62 = vpop.permute.xlu0 %738 }
 0x154   : > { %v1139_v27 = vunpack.c.l.b16 %v1083_v22  ;;  %v1140_v35 = vunpack.c.h.b16 %v1083_v22 }
 0x155   : > { %v828_v46 = vpack.c.bf16 %v796_v25, %v796_v25 }
 0x156   : > { %v1171_v1 = vpack.c.b16 %v1139_v27, %v1139_v27  ;;  %v1172_v45 = vpack.c.b16 %v1140_v35, %v1140_v35 }
 0x157   : > { %v924_v30 = vunpack.c.l.b16 %v828_v46 }
 0x158   : > { %1236 = vst.msk [vmem:[%s1978_s12 + $0x30] sm:$0xf] %vm1223_vm12, %v1171_v1 }
 0x159   : > { %1237 = vst.msk [vmem:[%s1978_s12 + $0x34] sm:$0xf] %vm1223_vm12, %v1172_v45  ;;  %v945_v23 = vpack.c.b16 %v925_v57, %v924_v30 }
 0x15a   : > { %v693_v6 = vpop.permute.xlu1 %692 }
 0x15b   : > { %v1098_v34 = vsel %vm1062_vm10, %v945_v23, %v1945_v8  ;;  %v781_v17 = vadd.f32 %v693_v6, %v621_v16  ;;  %v709_v18 = vpop.permute.xlu0 %708  ;;  %v804_v8 = vadd.f32 %v739_v62, %v644_v59 }
 0x15c   : > { %v1149_v44 = vunpack.c.l.b16 %v1098_v34  ;;  %v1150_v58 = vunpack.c.h.b16 %v1098_v34  ;;  %v789_v41 = vadd.f32 %v709_v18, %v629_v26 }
 0x15d   : > { %v813_v51 = vpack.c.bf16 %v781_v17, %v781_v17  ;;  %v836_v24 = vpack.c.bf16 %v804_v8, %v804_v8 }
 0x15e   : > { %v1181_v37 = vpack.c.b16 %v1149_v44, %v1149_v44  ;;  %v1182_v38 = vpack.c.b16 %v1150_v58, %v1150_v58  ;;  %v821_v0 = vpack.c.bf16 %v789_v41, %v789_v41 }
 0x15f   : > { %v909_v55 = vunpack.c.l.b16 %v813_v51  ;;  %v932_v62 = vunpack.c.l.b16 %v836_v24 }
 0x160   : > { %1246 = vst.msk [vmem:[%s1978_s12 + $0x58] sm:$0xf] %vm1223_vm12, %v1181_v37  ;;  %v917_v7 = vunpack.c.l.b16 %v821_v0 }
 0x161   : > { %1247 = vst.msk [vmem:[%s1978_s12 + $0x5c] sm:$0xf] %vm1223_vm12, %v1182_v38  ;;  %v937_v11 = vpack.c.b16 %v909_v55, %v908_v54 }
 0x162   : > { %v941_v4 = vpack.c.b16 %v917_v7, %v916_v43  ;;  %v741_v33 = vpop.permute.xlu1 %740 }
 0x163   : > { %v1074_v13 = vsel %vm1062_vm10, %v937_v11, %v1865_v20  ;;  %v805_v47 = vadd.f32 %v741_v33, %v645_v31  ;;  %v1057_v14 = vpop.permute.xlu0 %1056 }
 0x164   : > { %v1133_v15 = vunpack.c.l.b16 %v1074_v13  ;;  %v1134_v12 = vunpack.c.h.b16 %v1074_v13  ;;  %v1086_v2 = vsel %vm1062_vm10, %v941_v4, %v1936_v61  ;;  %v1104_v36 = vsel %vm1062_vm10, %v947_v52, %v1057_v14 }
 0x165   : > { %v1141_v53 = vunpack.c.l.b16 %v1086_v2  ;;  %v1142_v39 = vunpack.c.h.b16 %v1086_v2  ;;  %v837_v29 = vpack.c.bf16 %v805_v47, %v805_v47  ;;  %v1153_v9 = vunpack.c.l.b16 %v1104_v36 }
 0x166   : > { %v1165_v20 = vpack.c.b16 %v1133_v15, %v1133_v15  ;;  %v1166_v22 = vpack.c.b16 %v1134_v12, %v1134_v12  ;;  %v1154_v25 = vunpack.c.h.b16 %v1104_v36 }
 0x167   : > { %v1173_v27 = vpack.c.b16 %v1141_v53, %v1141_v53  ;;  %v1174_v35 = vpack.c.b16 %v1142_v39, %v1142_v39  ;;  %v933_v61 = vunpack.c.l.b16 %v837_v29  ;;  %v1185_v3 = vpack.c.b16 %v1153_v9, %v1153_v9 }
 0x168   : > { %1230 = vst.msk [vmem:[%s1978_s12 + $0x18] sm:$0xf] %vm1223_vm12, %v1165_v20  ;;  %v1186_v40 = vpack.c.b16 %v1154_v25, %v1154_v25 }
 0x169   : > { %1231 = vst.msk [vmem:[%s1978_s12 + $0x1c] sm:$0xf] %vm1223_vm12, %v1166_v22  ;;  %v949_v52 = vpack.c.b16 %v933_v61, %v932_v62 }
 0x16a   : > { %1238 = vst.msk [vmem:[%s1978_s12 + $0x38] sm:$0xf] %vm1223_vm12, %v1173_v27  ;;  %v1059_v5 = vpop.permute.xlu1 %1058 }
 0x16b   : > { %1239 = vst.msk [vmem:[%s1978_s12 + $0x3c] sm:$0xf] %vm1223_vm12, %v1174_v35  ;;  %v1110_v46 = vsel %vm1062_vm10, %v949_v52, %v1061_v56  ;;  %v1107_v1 = vsel %vm1062_vm10, %v948_v10, %v1059_v5 }
 0x16c   : > { %1250 = vst.msk [vmem:[%s1978_s12 + $0x68] sm:$0xf] %vm1223_vm12, %v1185_v3  ;;  %v1157_v45 = vunpack.c.l.b16 %v1110_v46  ;;  %v1158_v32 = vunpack.c.h.b16 %v1110_v46  ;;  %v1155_v57 = vunpack.c.l.b16 %v1107_v1  ;;  %v1156_v60 = vunpack.c.h.b16 %v1107_v1 }
 0x16d   : > { %1251 = vst.msk [vmem:[%s1978_s12 + $0x6c] sm:$0xf] %vm1223_vm12, %v1186_v40 }
 0x16e   : > { %v1189_v30 = vpack.c.b16 %v1157_v45, %v1157_v45  ;;  %v1190_v48 = vpack.c.b16 %v1158_v32, %v1158_v32  ;;  %v1187_v50 = vpack.c.b16 %v1155_v57, %v1155_v57  ;;  %v1188_v23 = vpack.c.b16 %v1156_v60, %v1156_v60 }
 0x170   : > { %1254 = vst.msk [vmem:[%s1978_s12 + $0x78] sm:$0xf] %vm1223_vm12, %v1189_v30 }
 0x171   : > { %1255 = vst.msk [vmem:[%s1978_s12 + $0x7c] sm:$0xf] %vm1223_vm12, %v1190_v48 }
 0x172   : > { %1252 = vst.msk [vmem:[%s1978_s12 + $0x70] sm:$0xf] %vm1223_vm12, %v1187_v50 }
 0x173   : > { %1253 = vst.msk [vmem:[%s1978_s12 + $0x74] sm:$0xf] %vm1223_vm12, %v1188_v23 }
 0x174 PF: > { %s14_s17 = sadd.s32 1, %s1619_s17   ;;  %s2201_s15 = smov %s1615_s16 }
 0x175   : > { %p11_p5 = scmp.ge.s32.totalorder %s14_s17, 4   ;;  %s2202_s16 = smov %s2204_s18 }
 0x177   :  { %13 = sbr.rel (!%p11_p5) target bundleno = 2 (0x2), region = 69 }

// kernel: _forward.6
= control target key start
LH: loop header
LB: loop body
LE: loop exit
PB: predicated region body
PF: predicated region fallthrough
CT: control target
= control target key end

     0   :  { %s878_s15 = smov 0   ;;  %s880_s16 = smov 0   ;;  %s1041_s0 = inlined_call_operand.vmem [shape: bf16[2,64,117], index: 0, kind: input, shape index: {}]   ;;  %s1042_s1 = inlined_call_operand.vmem [shape: bf16[117,16], index: 1, kind: input, shape index: {}]   ;;  %s1043_s2 = inlined_call_operand.vmem [shape: bf16[13,16], index: 2, kind: input, shape index: {}]   ;;  %s1044_s3 = inlined_call_operand.vmem [shape: f32[1,16], index: 3, kind: input, shape index: {}]   ;;  %s1045_s4 = inlined_call_operand.vmem [shape: bf16[2,64,16], index: 4, kind: output, shape index: {}]  }
   0x1   :  { %s882_s17 = smov 0  }
   0x2 LB: > { %s26_s18 = sadd.s32 1, %s845_s16  ;;  %p693_p0 = scmp.ge.s32.totalorder %s849_s17, 1  ;;  %s849_s17 = sphi %s882_s17, %s14_s17   ;;  %s845_s16 = sphi %s880_s16, %s1047_s16   ;;  %s841_s15 = sphi %s878_s15, %s1046_s15  }
   0x3   : > { %p28_p1 = scmp.ge.s32.totalorder %s26_s18, 2  ;;  %p181_p2 = scmp.lt.s32.totalorder %s849_s17, 3 }
   0x5   : > { %s1049_s18 = smov (%p28_p1, %s26_s18), 0  ;;  %p182_p3 = pnand %p693_p0, %p181_p2 }
   0x6   : > { %p212_p4 = scmp.lt.s32.totalorder (!%p182_p3), %s841_s15, 1 }
   0x7   : > { %185 = sbr.rel (%p182_p3) target bundleno = 286 (0x11e), region = 36 }
   0xc   : > { %v255_v0 = vld [vmem:[%s1042_s1 + $0x38] sm:$0x7]  ;;  %vm334_vm0 = vcmask 1041408   ;;  %vm335_vm1 = vcmask 1042432   ;;  %v851_v2 = vmov 65535   ;;  %v768_v7 = vld [vmem:[%s1042_s1 + $0x30] sm:$0xff] }
   0xd   : > { %v305_v1 = vunpack.c.l.b16 %v255_v0  ;;  %v336_v3 = vsel %vm334_vm0, 4294967295, %v851_v2  ;;  %v767_v8 = vld [vmem:[%s1042_s1 + $0x28] sm:$0xff]  ;;  %v766_v9 = vld [vmem:[%s1042_s1 + $0x20] sm:$0xff]  ;;  %v765_v10 = vld [vmem:[%s1042_s1 + $0x18] sm:$0xff]  ;;  %s1051_s15 = smov (!%p212_p4, %s841_s15), 1  ;;  %vm447_vm2 = vcmask 1045504  }
   0xe   : > { %v337_v4 = vsel %vm335_vm1, %v336_v3, 0  ;;  %v748_v11 = vld [vmem:[%s1043_s2] sm:$0xf]  ;;  %v769_v12 = vld [vmem:[%s1043_s2] sm:$0x70]  ;;  %vm448_vm3 = vcmask 1046528  }
   0xf   : > { %v313_v5 = vpack.c.b16 %v305_v1, %v305_v1  ;;  %v764_v13 = vld [vmem:[%s1042_s1 + $0x10] sm:$0xff]  ;;  %v749_v14 = vor.u32 %v769_v12, %v748_v11  ;;  %v449_v15 = vsel %vm447_vm2, 4294967295, %v851_v2  ;;  %s756_s9 = sshll.u32 %s1051_s15, 5  ;;  %v763_v18 = vld [vmem:[%s1042_s1 + $0x8] sm:$0xff]  ;;  %vm438_vm4 = vcmask 105472   ;;  %v762_v21 = vld [vmem:[%s1042_s1] sm:$0xff] }
  0x10   : > { %v450_v16 = vsel %vm448_vm3, %v449_v15, 0  ;;  %s219_s14 = scalar_lea.vmem %s1041_s0, %s756_s9  ;;  %vm321_vm5 = vcmask 957440   ;;  %vm371_vm6 = vcmask 130048   ;;  %vm231_vm7 = vcmask 123904   ;;  %v949_v29 = vld [vmem:[%s1044_s3] ss:$0 sm:$0xff]  ;;  %s958_s25 = scalar_lea.vmem %s1045_s4, %s756_s9 }
  0x11   : > { %v339_v6 = vand.u32 %v337_v4, %v313_v5  ;;  %v452_v17 = vand.u32 %v749_v14, %v450_v16  ;;  %v758_v19 = vld [vmem:[%s219_s14] sm:$0xff]  ;;  %v759_v20 = vld [vmem:[%s219_s14 + $0x8] sm:$0xff]  ;;  %v760_v22 = vld [vmem:[%s219_s14 + $0x10] sm:$0xff]  ;;  %v852_v24 = vmov 0.0   ;;  %vm499_vm8 = vcmask 125952  }
  0x12   : > { %v761_v23 = vld [vmem:[%s219_s14 + $0x18] sm:$0xff]  ;;  %232 = vst.msk [vmem:[#allocation3] sm:$0x3] %vm231_vm7, %v852_v24  ;;  %vm422_vm9 = vcmask 1040384  }
  0x13   : > { %341 = vmatpush.bf16.msra.mxu0 %v339_v6  ;;  %789 = vmatpush.bf16.msra.mxu2 %v339_v6 }
  0x14   : > { %797 = vmatpush.bf16.msra.mxu3 %v452_v17  ;;  %461 = vmatpush.bf16.msra.mxu1 %v452_v17 }
  0x17   : > { %342 = vmatpush.bf16.msra.mxu0 %v768_v7  ;;  %790 = vmatpush.bf16.msra.mxu2 %v768_v7 }
  0x18   : > { %751 = vmatmul.msk.bf16.vlgmr.msra.gmra.mxu3 %vm438_vm4, %v759_v20  ;;  %750 = vmatmul.msk.bf16.vlgmr.msra.gmra.mxu1 %vm438_vm4, %v758_v19 }
  0x1b   : > { %343 = vmatpush.bf16.msra.mxu0 %v767_v8  ;;  %791 = vmatpush.bf16.msra.mxu2 %v767_v8 }
  0x1f   : > { %344 = vmatpush.bf16.msra.mxu0 %v766_v9  ;;  %792 = vmatpush.bf16.msra.mxu2 %v766_v9 }
  0x23   : > { %345 = vmatpush.bf16.msra.mxu0 %v765_v10  ;;  %793 = vmatpush.bf16.msra.mxu2 %v765_v10 }
  0x27   : > { %346 = vmatpush.bf16.msra.mxu0 %v764_v13  ;;  %794 = vmatpush.bf16.msra.mxu2 %v764_v13 }
  0x28   : > { %752 = vmatmul.msk.bf16.gmra.mxu3 %vm438_vm4, %v760_v22 }
  0x2b   : > { %347 = vmatpush.bf16.msra.mxu0 %v763_v18  ;;  %795 = vmatpush.bf16.msra.mxu2 %v763_v18 }
  0x2f   : > { %348 = vmatpush.bf16.msra.mxu0 %v762_v21  ;;  %796 = vmatpush.bf16.msra.mxu2 %v762_v21 }
  0x32   : > { %742 = vmatmul.msk.bf16.vlgmr.msra.gmra.mxu0 %vm321_vm5, %v758_v19  ;;  %744 = vmatmul.msk.bf16.vlgmr.msra.gmra.mxu2 %vm321_vm5, %v760_v22 }
  0x38   : > { %753 = vmatmul.msk.bf16.gmra.mxu3 %vm438_vm4, %v761_v23 }
  0x42   : > { %743 = vmatmul.msk.bf16.gmra.mxu0 %vm321_vm5, %v759_v20  ;;  %745 = vmatmul.msk.bf16.gmra.mxu2 %vm321_vm5, %v761_v23 }
  0x95   : > { %v463_v23 = vpop.f32.mrf.mxu1 }
  0x9b   : > { %v468_v26 = vpop.f32.mrf.mxu3 }
  0x9c   : > { %v469_v31 = vadd.f32 %v949_v29, %v468_v26 }
  0x9e   : > { %v493_v34 = vpack.c.bf16 %v469_v31, %v469_v31 }
  0xa0   : > { %502 = vst.msk [vmem:[%s958_s25 + $0x8] sm:$0xf] %vm499_vm8, %v493_v34  ;;  %v464_v34 = vadd.f32 %v949_v29, %v463_v23 }
  0xa3   : > { %v470_v30 = vpop.f32.mrf.mxu3 }
  0xa4   : > { %v471_v32 = vadd.f32 %v949_v29, %v470_v30 }
  0xa6   : > { %v494_v35 = vpack.c.bf16 %v471_v32, %v471_v32 }
  0xa8   : > { %503 = vst.msk [vmem:[%s958_s25 + $0xc] sm:$0xf] %vm499_vm8, %v494_v35 }
  0xab   : > { %v473_v41 = vpop.f32.mrf.mxu3 }
  0xac   : > { %v474_v2 = vadd.f32 %v949_v29, %v473_v41  ;;  %v491_v41 = vpack.c.bf16 %v464_v34, %v464_v34 }
  0xae   : > { %v495_v10 = vpack.c.bf16 %v474_v2, %v474_v2  ;;  %500 = vst.msk [vmem:[%s958_s25] sm:$0xf] %vm499_vm8, %v491_v41 }
  0xaf   : > { %v350_v25 = vpop.f32.mrf.mxu0 }
  0xb0   : > { %483 = vst.msk [vmem:[#allocation2] sm:$0xff] %vm371_vm6, %v350_v25  ;;  %v393_v38 = vmul.f32 %v350_v25, %v350_v25  ;;  %v372_v42 = vsel %vm371_vm6, %v350_v25, 0.0 }
  0xb1   : > { %504 = vst.msk [vmem:[%s958_s25 + $0x10] sm:$0xf] %vm499_vm8, %v495_v10 }
  0xb2   : > { %v401_v47 = vsel %vm371_vm6, %v393_v38, 0.0 }
  0xb3   : > { %v475_v63 = vpop.f32.mrf.mxu3 }
  0xb4   : > { %v476_v3 = vadd.f32 %v949_v29, %v475_v63 }
  0xb5   : > { %v360_v27 = vpop.f32.mrf.mxu2 }
  0xb6   : > { %487 = vst.msk [vmem:[#allocation2 + $0x20] sm:$0xff] %vm371_vm6, %v360_v27  ;;  %v397_v49 = vmul.f32 %v360_v27, %v360_v27  ;;  %v379_v58 = vsel %vm371_vm6, %v360_v27, 0.0  ;;  %v496_v11 = vpack.c.bf16 %v476_v3, %v476_v3 }
  0xb7   : > { %v352_v28 = vpop.f32.mrf.mxu0 }
  0xb8   : > { %484 = vst.msk [vmem:[#allocation2 + $0x8] sm:$0xff] %vm371_vm6, %v352_v28  ;;  %v394_v37 = vmul.f32 %v352_v28, %v352_v28  ;;  %v373_v39 = vsel %vm371_vm6, %v352_v28, 0.0  ;;  %v408_v60 = vsel %vm371_vm6, %v397_v49, 0.0 }
  0xb9   : > { %v374_v45 = vadd.f32 %v373_v39, %v372_v42  ;;  %505 = vst.msk [vmem:[%s958_s25 + $0x14] sm:$0xf] %vm499_vm8, %v496_v11 }
  0xba   : > { %v402_v43 = vsel %vm371_vm6, %v394_v37, 0.0  ;;  %v370_v37 = vld [vmem:[#allocation3] sm:$0x3] }
  0xbb   : > { %v403_v50 = vadd.f32 %v402_v43, %v401_v47  ;;  %v478_v24 = vpop.f32.mrf.mxu3 }
  0xbc   : > { %v479_v35 = vadd.f32 %v949_v29, %v478_v24 }
  0xbd   : > { %v362_v33 = vpop.f32.mrf.mxu2 }
  0xbe   : > { %488 = vst.msk [vmem:[#allocation2 + $0x28] sm:$0xff] %vm371_vm6, %v362_v33  ;;  %v398_v55 = vmul.f32 %v362_v33, %v362_v33  ;;  %v381_v0 = vsel %vm371_vm6, %v362_v33, 0.0  ;;  %v465_v33 = vpop.f32.mrf.mxu1  ;;  %v497_v42 = vpack.c.bf16 %v479_v35, %v479_v35 }
  0xbf   : > { %v355_v36 = vpop.f32.mrf.mxu0 }
  0xc0   : > { %485 = vst.msk [vmem:[#allocation2 + $0x10] sm:$0xff] %vm371_vm6, %v355_v36  ;;  %v395_v40 = vmul.f32 %v355_v36, %v355_v36  ;;  %v375_v44 = vsel %vm371_vm6, %v355_v36, 0.0  ;;  %v410_v4 = vsel %vm371_vm6, %v398_v55, 0.0  ;;  %v466_v36 = vadd.f32 %v949_v29, %v465_v33 }
  0xc1   : > { %v376_v51 = vadd.f32 %v375_v44, %v374_v45  ;;  %506 = vst.msk [vmem:[%s958_s25 + $0x18] sm:$0xf] %vm499_vm8, %v497_v42 }
  0xc2   : > { %v404_v48 = vsel %vm371_vm6, %v395_v40, 0.0  ;;  %v492_v45 = vpack.c.bf16 %v466_v36, %v466_v36 }
  0xc3   : > { %v405_v56 = vadd.f32 %v404_v48, %v403_v50  ;;  %v480_v40 = vpop.f32.mrf.mxu3 }
  0xc4   : > { %v481_v43 = vadd.f32 %v949_v29, %v480_v40  ;;  %501 = vst.msk [vmem:[%s958_s25 + $0x4] sm:$0xf] %vm499_vm8, %v492_v45 }
  0xc5   : > { %v365_v46 = vpop.f32.mrf.mxu2  ;;  %v535_v10 = vld [vmem:[#allocation2 + $0x28] sm:$0xff] }
  0xc6   : > { %489 = vst.msk [vmem:[#allocation2 + $0x30] sm:$0xff] %vm371_vm6, %v365_v46  ;;  %v399_v1 = vmul.f32 %v365_v46, %v365_v46  ;;  %v383_v8 = vsel %vm371_vm6, %v365_v46, 0.0  ;;  %v498_v47 = vpack.c.bf16 %v481_v43, %v481_v43 }
  0xc7   : > { %v357_v52 = vpop.f32.mrf.mxu0 }
  0xc8   : > { %v377_v53 = vsel %vm371_vm6, %v357_v52, 0.0  ;;  %v396_v54 = vmul.f32 %v357_v52, %v357_v52  ;;  %486 = vst.msk [vmem:[#allocation2 + $0x18] sm:$0xff] %vm371_vm6, %v357_v52  ;;  %v412_v14 = vsel %vm371_vm6, %v399_v1, 0.0 }
  0xc9   : > { %v378_v57 = vadd.f32 %v377_v53, %v376_v51  ;;  %507 = vst.msk [vmem:[%s958_s25 + $0x1c] sm:$0xf] %vm499_vm8, %v498_v47 }
  0xca   : > { %v406_v59 = vsel %vm371_vm6, %v396_v54, 0.0 }
  0xcb   : > { %v380_v61 = vadd.f32 %v379_v58, %v378_v57  ;;  %v407_v62 = vadd.f32 %v406_v59, %v405_v56 }
  0xcd   : > { %v409_v5 = vadd.f32 %v408_v60, %v407_v62  ;;  %v367_v6 = vpop.f32.mrf.mxu2  ;;  %v382_v7 = vadd.f32 %v381_v0, %v380_v61  ;;  %v786_v60 = vld [vmem:[%s958_s25 + $0x8] sm:$0xff]   ;;  %v787_v61 = vld [vmem:[%s958_s25 + $0x10] sm:$0xff]   ;;  %v1007_v62 = vld [vmem:[%s958_s25] sm:$0xff]  }
  0xce   : > { %v400_v9 = vmul.f32 %v367_v6, %v367_v6  ;;  %490 = vst.msk [vmem:[#allocation2 + $0x38] sm:$0xff] %vm371_vm6, %v367_v6  ;;  %v385_v15 = vsel %vm371_vm6, %v367_v6, 0.0  ;;  %v532_v0 = vld [vmem:[#allocation2 + $0x10] sm:$0xff]  ;;  %v776_v1 = vunpack.c.l.bf16 %v786_v60  ;;  %v777_v2 = vunpack.c.h.bf16 %v786_v60 }
  0xcf   : > { %v384_v12 = vadd.f32 %v383_v8, %v382_v7  ;;  %v411_v13 = vadd.f32 %v410_v4, %v409_v5  ;;  %v780_v3 = vunpack.c.l.bf16 %v787_v61  ;;  %v781_v4 = vunpack.c.h.bf16 %v787_v61  ;;  %v530_v5 = vld [vmem:[#allocation2] sm:$0xff]  ;;  %v533_v7 = vld [vmem:[#allocation2 + $0x18] sm:$0xff] }
  0xd0   : > { %v414_v18 = vsel %vm371_vm6, %v400_v9, 0.0  ;;  %v534_v9 = vld [vmem:[#allocation2 + $0x20] sm:$0xff]  ;;  %v772_v11 = vunpack.c.l.bf16 %v1007_v62 }
  0xd1   : > { %v386_v16 = vadd.f32 %v385_v15, %v384_v12  ;;  %v413_v17 = vadd.f32 %v412_v14, %v411_v13  ;;  %v773_v12 = vunpack.c.h.bf16 %v1007_v62 }
  0xd3   : > { %v387_v19 = vrot.slane %v386_v16, 4  ;;  %v415_v20 = vadd.f32 %v414_v18, %v413_v17  ;;  %v531_v17 = vld [vmem:[#allocation2 + $0x8] sm:$0xff]  ;;  %v536_v18 = vld [vmem:[#allocation2 + $0x30] sm:$0xff] }
  0xd5   : > { %v388_v21 = vadd.f32 %v387_v19, %v386_v16  ;;  %v416_v22 = vrot.slane %v415_v20, 4  ;;  %v537_v19 = vld [vmem:[#allocation2 + $0x38] sm:$0xff] }
  0xd7   : > { %v389_v25 = vrot.slane %v388_v21, 2  ;;  %v417_v26 = vadd.f32 %v416_v22, %v415_v20 }
  0xd9   : > { %v390_v27 = vadd.f32 %v389_v25, %v388_v21  ;;  %v418_v28 = vrot.slane %v417_v26, 2 }
  0xdb   : > { %v391_v30 = vrot.slane %v390_v27, 1  ;;  %v419_v31 = vadd.f32 %v418_v28, %v417_v26 }
  0xdd   : > { %v420_v32 = vrot.slane %v419_v31, 1  ;;  %v392_v38 = vadd.f32 %v391_v30, %v390_v27 }
  0xdf   : > { %v421_v39 = vadd.f32 %v420_v32, %v419_v31 }
  0xe1   : > { %v423_v44 = vsel %vm422_vm9, %v392_v38, %v421_v39 }
  0xe2   : > { %v424_v46 = vadd.f32 %v423_v44, %v370_v37 }
  0xe4   : > { %426 = vst.msk [vmem:[#allocation3] sm:$0x3] %vm231_vm7, %v424_v46 }
  0xeb   : > { %v511_v48 = vld [vmem:[#allocation3] sm:$0x3] }
  0xec   : > { %v512_v49 = vmul.f32 0.015625, %v511_v48 }
  0xee   : > { %v513_v29 = vmul.f32 %v512_v49, %v512_v49  ;;  %v538_v59 = vperm.slane %v512_v49, 0 }
  0xf0   : > { %v515_v50 = vrot.slane %v513_v29, 7  ;;  %v541_v8 = vsub.f32 %v532_v0, %v538_v59  ;;  %v542_v13 = vsub.f32 %v533_v7, %v538_v59  ;;  %v543_v15 = vsub.f32 %v534_v9, %v538_v59 }
  0xf1   : > { %v544_v16 = vsub.f32 %v535_v10, %v538_v59  ;;  %v539_v20 = vsub.f32 %v530_v5, %v538_v59  ;;  %v540_v21 = vsub.f32 %v531_v17, %v538_v59  ;;  %v545_v22 = vsub.f32 %v536_v18, %v538_v59 }
  0xf2   : > { %v517_v51 = vsub.f32 %v512_v49, %v515_v50  ;;  %v546_v23 = vsub.f32 %v537_v19, %v538_v59  ;;  %v788_v49 = vld [vmem:[%s958_s25 + $0x18] sm:$0xff]  }
  0xf4   : > { %v518_v52 = vmax.f32 %v517_v51, 0.0 }
  0xf6   : > { %v519_v53 = vadd.f32 1e-05, %v518_v52 }
  0xf8   : > { %825 = vrsqrt.f32 %v519_v53  ;;  %vm526_vm11 = vweird.f32 %v519_v53 }
  0xfe   : > { %v826_v54 = vpop.eup %825 }
  0xff   : > { %v521_v55 = vmul.f32 %v826_v54, %v519_v53  ;;  %vm527_vm10 = vweird.f32 %v826_v54 }
 0x100   : > { %vm528_vm12 = vmor %vm526_vm11, %vm527_vm10 }
 0x101   : > { %v522_v56 = vmul.f32 %v826_v54, %v521_v55 }
 0x103   : > { %v523_v57 = vmul.f32 0.5, %v522_v56 }
 0x105   : > { %v524_v58 = vsub.f32 1.5, %v523_v57  ;;  %v784_v57 = vunpack.c.l.bf16 %v788_v49 }
 0x107   : > { %v525_v63 = vmul.f32 %v826_v54, %v524_v58  ;;  %v785_v58 = vunpack.c.h.bf16 %v788_v49 }
 0x109   : > { %v529_v6 = vsel %vm528_vm12, %v826_v54, %v525_v63 }
 0x10a   : > { %v547_v14 = vperm.slane %v529_v6, 1 }
 0x10c   : > { %v550_v24 = vmul.f32 %v547_v14, %v541_v8  ;;  %v551_v25 = vmul.f32 %v547_v14, %v542_v13  ;;  %v552_v26 = vmul.f32 %v547_v14, %v543_v15  ;;  %v553_v27 = vmul.f32 %v547_v14, %v544_v16 }
 0x10d   : > { %v548_v28 = vmul.f32 %v547_v14, %v539_v20  ;;  %v549_v30 = vmul.f32 %v547_v14, %v540_v21  ;;  %v554_v31 = vmul.f32 %v547_v14, %v545_v22  ;;  %v555_v32 = vmul.f32 %v547_v14, %v546_v23 }
 0x10e   : > { %vm558_vm13 = vcmp.gt.f32.partialorder %v550_v24, 0.0  ;;  %vm559_vm14 = vcmp.gt.f32.partialorder %v551_v25, 0.0  ;;  %v566_v33 = vmul.f32 0.15, %v550_v24  ;;  %v567_v34 = vmul.f32 0.15, %v551_v25 }
 0x10f   : > { %vm560_vm15 = vcmp.gt.f32.partialorder %v552_v26, 0.0  ;;  %vm561_vm0 = vcmp.gt.f32.partialorder %v553_v27, 0.0  ;;  %v568_v35 = vmul.f32 0.15, %v552_v26  ;;  %v569_v36 = vmul.f32 0.15, %v553_v27 }
 0x110   : > { %v574_v37 = vsel %vm558_vm13, %v550_v24, %v566_v33  ;;  %v575_v38 = vsel %vm559_vm14, %v551_v25, %v567_v34  ;;  %vm556_vm1 = vcmp.gt.f32.partialorder %v548_v28, 0.0  ;;  %vm557_vm2 = vcmp.gt.f32.partialorder %v549_v30, 0.0 }
 0x111   : > { %v598_v39 = vadd.f32 %v776_v1, %v574_v37  ;;  %v599_v40 = vadd.f32 %v777_v2, %v575_v38  ;;  %v576_v41 = vsel %vm560_vm15, %v552_v26, %v568_v35  ;;  %v577_v42 = vsel %vm561_vm0, %v553_v27, %v569_v36 }
 0x112   : > { %v600_v43 = vadd.f32 %v780_v3, %v576_v41  ;;  %v601_v44 = vadd.f32 %v781_v4, %v577_v42  ;;  %v564_v45 = vmul.f32 0.15, %v548_v28  ;;  %v565_v46 = vmul.f32 0.15, %v549_v30 }
 0x113   : > { %v606_v47 = vpack.c.bf16 %v598_v39, %v598_v39  ;;  %v607_v48 = vpack.c.bf16 %v599_v40, %v599_v40  ;;  %vm562_vm3 = vcmp.gt.f32.partialorder %v554_v31, 0.0  ;;  %vm563_vm4 = vcmp.gt.f32.partialorder %v555_v32, 0.0 }
 0x114   : > { %v608_v29 = vpack.c.bf16 %v600_v43, %v600_v43  ;;  %v609_v50 = vpack.c.bf16 %v601_v44, %v601_v44  ;;  %v572_v51 = vsel %vm556_vm1, %v548_v28, %v564_v45  ;;  %v573_v52 = vsel %vm557_vm2, %v549_v30, %v565_v46 }
 0x115   : > { %614 = vst.msk [vmem:[%s958_s25 + $0x8] sm:$0xf] %vm499_vm8, %v606_v47  ;;  %v596_v53 = vadd.f32 %v772_v11, %v572_v51  ;;  %v597_v54 = vadd.f32 %v773_v12, %v573_v52  ;;  %v570_v55 = vmul.f32 0.15, %v554_v31  ;;  %v571_v56 = vmul.f32 0.15, %v555_v32 }
 0x116   : > { %615 = vst.msk [vmem:[%s958_s25 + $0xc] sm:$0xf] %vm499_vm8, %v607_v48 }
 0x117   : > { %616 = vst.msk [vmem:[%s958_s25 + $0x10] sm:$0xf] %vm499_vm8, %v608_v29  ;;  %v604_v59 = vpack.c.bf16 %v596_v53, %v596_v53  ;;  %v605_v60 = vpack.c.bf16 %v597_v54, %v597_v54  ;;  %v578_v61 = vsel %vm562_vm3, %v554_v31, %v570_v55  ;;  %v579_v62 = vsel %vm563_vm4, %v555_v32, %v571_v56 }
 0x118   : > { %617 = vst.msk [vmem:[%s958_s25 + $0x14] sm:$0xf] %vm499_vm8, %v609_v50  ;;  %v602_v63 = vadd.f32 %v784_v57, %v578_v61  ;;  %v603_v0 = vadd.f32 %v785_v58, %v579_v62 }
 0x119   : > { %612 = vst.msk [vmem:[%s958_s25] sm:$0xf] %vm499_vm8, %v604_v59 }
 0x11a   : > { %613 = vst.msk [vmem:[%s958_s25 + $0x4] sm:$0xf] %vm499_vm8, %v605_v60  ;;  %v610_v1 = vpack.c.bf16 %v602_v63, %v602_v63  ;;  %v611_v2 = vpack.c.bf16 %v603_v0, %v603_v0 }
 0x11c   : > { %618 = vst.msk [vmem:[%s958_s25 + $0x18] sm:$0xf] %vm499_vm8, %v610_v1 }
 0x11d   : > { %619 = vst.msk [vmem:[%s958_s25 + $0x1c] sm:$0xf] %vm499_vm8, %v611_v2 }
 0x11e PF: > { %s14_s17 = sadd.s32 1, %s849_s17   ;;  %s1046_s15 = smov %s845_s16 }
 0x11f   : > { %p11_p5 = scmp.ge.s32.totalorder %s14_s17, 4   ;;  %s1047_s16 = smov %s1049_s18 }
 0x121   :  { %13 = sbr.rel (!%p11_p5) target bundleno = 2 (0x2), region = 74 }

// kernel: _forward.7
= control target key start
LH: loop header
LB: loop body
LE: loop exit
PB: predicated region body
PF: predicated region fallthrough
CT: control target
= control target key end

     0   :  { %s689_s15 = smov 0   ;;  %s691_s16 = smov 0   ;;  %s778_s0 = inlined_call_operand.vmem [shape: bf16[2,16,144], index: 0, kind: input, shape index: {}]   ;;  %s779_s1 = inlined_call_operand.vmem [shape: bf16[144,32], index: 1, kind: input, shape index: {}]   ;;  %s780_s2 = inlined_call_operand.vmem [shape: bf16[16,32], index: 2, kind: input, shape index: {}]   ;;  %s781_s3 = inlined_call_operand.vmem [shape: f32[1,32], index: 3, kind: input, shape index: {}]   ;;  %s782_s4 = inlined_call_operand.vmem [shape: bf16[2,16,32], index: 4, kind: output, shape index: {}]  }
   0x1   :  { %s693_s17 = smov 0  }
   0x2 LB: > { %s26_s18 = sadd.s32 1, %s657_s16  ;;  %p536_p0 = scmp.ge.s32.totalorder %s661_s17, 1  ;;  %s661_s17 = sphi %s693_s17, %s14_s17   ;;  %s657_s16 = sphi %s691_s16, %s784_s16   ;;  %s653_s15 = sphi %s689_s15, %s783_s15  }
   0x3   : > { %p28_p1 = scmp.ge.s32.totalorder %s26_s18, 2  ;;  %p182_p2 = scmp.lt.s32.totalorder %s661_s17, 3 }
   0x5   : > { %s786_s18 = smov (%p28_p1, %s26_s18), 0  ;;  %p183_p3 = pnand %p536_p0, %p182_p2 }
   0x6   : > { %p214_p4 = scmp.lt.s32.totalorder (!%p183_p3), %s653_s15, 1 }
   0x7   : > { %186 = sbr.rel (%p183_p3) target bundleno = 251 (0xfb), region = 36 }
   0xc   : > { %v604_v0 = vld [vmem:[%s779_s1 + $0x38] sm:$0xff]  ;;  %v603_v1 = vld [vmem:[%s779_s1 + $0x30] sm:$0xff]  ;;  %v605_v2 = vld [vmem:[%s779_s1 + $0x40] sm:$0xff]  ;;  %s788_s15 = smov (!%p214_p4, %s653_s15), 1  ;;  %vm319_vm0 = vcmask 130048   ;;  %vm234_vm1 = vcmask 254976  }
   0xd   : > { %323 = vmatpush.bf16.msra.mxu0 %v604_v0  ;;  %v606_v3 = vld [vmem:[%s780_s2] sm:$0xff]  ;;  %344 = vmatpush.bf16.msra.mxu1 %v605_v2  ;;  %s593_s27 = sshll.u32 %s788_s15, 4  ;;  %v602_v4 = vld [vmem:[%s779_s1 + $0x28] sm:$0xff]  ;;  %v600_v12 = vld [vmem:[%s779_s1 + $0x18] sm:$0xff]  ;;  %v663_v16 = vmov 0.0   ;;  %s594_s21 = sshll.u32 %s788_s15, 3 }
   0xe   : > { %s222_s6 = scalar_lea.vmem %s778_s0, %s593_s27  ;;  %400 = vmatpush.bf16.msra.mxu2 %v606_v3  ;;  %v601_v11 = vld [vmem:[%s779_s1 + $0x20] sm:$0xff]  ;;  %v599_v13 = vld [vmem:[%s779_s1 + $0x10] sm:$0xff]  ;;  %v598_v14 = vld [vmem:[%s779_s1 + $0x8] sm:$0xff]  ;;  %235 = vst.msk [vmem:[#allocation3] sm:$0x3] %vm234_vm1, %v663_v16  ;;  %vm352_vm2 = vcmask 261120   ;;  %s751_s26 = scalar_lea.vmem %s782_s4, %s594_s21 }
   0xf   : > { %v595_v5 = vld [vmem:[%s222_s6 + $0x4] sm:$0xf]  ;;  %v545_v6 = vld [vmem:[%s222_s6 + $0x8] sm:$0xf0]  ;;  %v543_v7 = vld [vmem:[%s222_s6] sm:$0xf] }
  0x10   : > { %v548_v8 = vor.u32 %v595_v5, %v545_v6  ;;  %v596_v9 = vld [vmem:[%s222_s6 + $0x4] sm:$0xf0]  ;;  %v597_v15 = vld [vmem:[%s779_s1] sm:$0xff]  ;;  %vm411_vm3 = vcmask 257024   ;;  %vm373_vm4 = vcmask 1040384  }
  0x11   : > { %324 = vmatpush.bf16.msra.mxu0 %v603_v1  ;;  %v544_v10 = vor.u32 %v596_v9, %v543_v7  ;;  %v636_v18 = vld [vmem:[%s781_s3] ss:$0 sm:$0xff] }
  0x12   : > { %585 = vmatmul.msk.bf16.vlgmr.msra.gmra.mxu1 %vm319_vm0, %v548_v8 }
  0x13   : > { %590 = vmatmul.msk.bf16.vlgmr.msra.gmra.mxu2 %vm319_vm0, %v544_v10 }
  0x15   : > { %325 = vmatpush.bf16.msra.mxu0 %v602_v4  ;;  %v351_v48 = vld [vmem:[#allocation3] sm:$0x3] }
  0x19   : > { %326 = vmatpush.bf16.msra.mxu0 %v601_v11 }
  0x1d   : > { %327 = vmatpush.bf16.msra.mxu0 %v600_v12 }
  0x21   : > { %328 = vmatpush.bf16.msra.mxu0 %v599_v13 }
  0x25   : > { %329 = vmatpush.bf16.msra.mxu0 %v598_v14 }
  0x29   : > { %330 = vmatpush.bf16.msra.mxu0 %v597_v15 }
  0x2c   : > { %331 = vmatmul.bf16.vlgmr.msra.gmra.mxu0 %v544_v10 }
  0x8f   : > { %v346_v17 = vpop.f32.mrf.mxu1 }
  0x96   : > { %v402_v19 = vpop.f32.mrf.mxu2 }
  0x97   : > { %v403_v22 = vadd.f32 %v636_v18, %v402_v19  ;;  %v348_v25 = vpop.f32.mrf.mxu1 }
  0x99   : > { %v409_v23 = vpack.c.bf16 %v403_v22, %v403_v22 }
  0x9b   : > { %412 = vst.msk [vmem:[%s751_s26] sm:$0xf] %vm411_vm3, %v409_v23 }
  0x9e   : > { %v404_v24 = vpop.f32.mrf.mxu2 }
  0x9f   : > { %v405_v27 = vadd.f32 %v636_v18, %v404_v24 }
  0xa1   : > { %v410_v30 = vpack.c.bf16 %v405_v27, %v405_v27 }
  0xa3   : > { %413 = vst.msk [vmem:[%s751_s26 + $0x4] sm:$0xf] %vm411_vm3, %v410_v30 }
  0xa9   : > { %v332_v20 = vpop.f32.mrf.mxu0 }
  0xaa   : > { %v347_v21 = vadd.f32 %v346_v17, %v332_v20  ;;  %v608_v11 = vld [vmem:[%s751_s26] sm:$0xff]  }
  0xab   : > { %v609_v14 = vunpack.c.l.bf16 %v608_v11  ;;  %v610_v15 = vunpack.c.h.bf16 %v608_v11 }
  0xac   : > { %407 = vst.msk [vmem:[#allocation2] sm:$0xff] %vm352_vm2, %v347_v21  ;;  %v362_v28 = vmul.f32 %v347_v21, %v347_v21  ;;  %v353_v31 = vsel %vm352_vm2, %v347_v21, 0.0 }
  0xae   : > { %v364_v35 = vsel %vm352_vm2, %v362_v28, 0.0 }
  0xb1   : > { %v334_v26 = vpop.f32.mrf.mxu0 }
  0xb2   : > { %v349_v29 = vadd.f32 %v348_v25, %v334_v26 }
  0xb3   : > { %v436_v4 = vld [vmem:[#allocation2] sm:$0xff] }
  0xb4   : > { %v354_v32 = vsel %vm352_vm2, %v349_v29, 0.0  ;;  %v363_v33 = vmul.f32 %v349_v29, %v349_v29  ;;  %408 = vst.msk [vmem:[#allocation2 + $0x8] sm:$0xff] %vm352_vm2, %v349_v29 }
  0xb5   : > { %v355_v34 = vadd.f32 %v354_v32, %v353_v31 }
  0xb6   : > { %v365_v36 = vsel %vm352_vm2, %v363_v33, 0.0 }
  0xb7   : > { %v356_v37 = vrot.slane %v355_v34, 4  ;;  %v366_v38 = vadd.f32 %v365_v36, %v364_v35 }
  0xb9   : > { %v357_v39 = vadd.f32 %v356_v37, %v355_v34  ;;  %v367_v40 = vrot.slane %v366_v38, 4 }
  0xbb   : > { %v358_v41 = vrot.slane %v357_v39, 2  ;;  %v368_v42 = vadd.f32 %v367_v40, %v366_v38  ;;  %v437_v5 = vld [vmem:[#allocation2 + $0x8] sm:$0xff] }
  0xbd   : > { %v359_v43 = vadd.f32 %v358_v41, %v357_v39  ;;  %v369_v44 = vrot.slane %v368_v42, 2 }
  0xbf   : > { %v360_v45 = vrot.slane %v359_v43, 1  ;;  %v370_v46 = vadd.f32 %v369_v44, %v368_v42 }
  0xc1   : > { %v371_v47 = vrot.slane %v370_v46, 1  ;;  %v361_v49 = vadd.f32 %v360_v45, %v359_v43 }
  0xc3   : > { %v372_v50 = vadd.f32 %v371_v47, %v370_v46 }
  0xc5   : > { %v374_v51 = vsel %vm373_vm4, %v361_v49, %v372_v50 }
  0xc6   : > { %v375_v52 = vadd.f32 %v374_v51, %v351_v48 }
  0xc8   : > { %377 = vst.msk [vmem:[#allocation3] sm:$0x3] %vm234_vm1, %v375_v52 }
  0xcf   : > { %v417_v53 = vld [vmem:[#allocation3] sm:$0x3] }
  0xd0   : > { %v418_v54 = vmul.f32 0.0625, %v417_v53 }
  0xd2   : > { %v419_v55 = vmul.f32 %v418_v54, %v418_v54  ;;  %v438_v1 = vperm.slane %v418_v54, 0 }
  0xd4   : > { %v421_v56 = vrot.slane %v419_v55, 7  ;;  %v439_v6 = vsub.f32 %v436_v4, %v438_v1  ;;  %v440_v7 = vsub.f32 %v437_v5, %v438_v1 }
  0xd6   : > { %v423_v57 = vsub.f32 %v418_v54, %v421_v56 }
  0xd8   : > { %v424_v58 = vmax.f32 %v423_v57, 0.0 }
  0xda   : > { %v425_v59 = vadd.f32 1e-05, %v424_v58 }
  0xdc   : > { %637 = vrsqrt.f32 %v425_v59  ;;  %vm432_vm6 = vweird.f32 %v425_v59 }
  0xe2   : > { %v638_v60 = vpop.eup %637 }
  0xe3   : > { %v427_v61 = vmul.f32 %v638_v60, %v425_v59  ;;  %vm433_vm5 = vweird.f32 %v638_v60 }
  0xe4   : > { %vm434_vm7 = vmor %vm432_vm6, %vm433_vm5 }
  0xe5   : > { %v428_v62 = vmul.f32 %v638_v60, %v427_v61 }
  0xe7   : > { %v429_v63 = vmul.f32 0.5, %v428_v62 }
  0xe9   : > { %v430_v0 = vsub.f32 1.5, %v429_v63 }
  0xeb   : > { %v431_v2 = vmul.f32 %v638_v60, %v430_v0 }
  0xed   : > { %v435_v3 = vsel %vm434_vm7, %v638_v60, %v431_v2 }
  0xee   : > { %v441_v8 = vperm.slane %v435_v3, 1 }
  0xf0   : > { %v442_v9 = vmul.f32 %v441_v8, %v439_v6  ;;  %v443_v10 = vmul.f32 %v441_v8, %v440_v7 }
  0xf2   : > { %vm444_vm8 = vcmp.gt.f32.partialorder %v442_v9, 0.0  ;;  %vm445_vm9 = vcmp.gt.f32.partialorder %v443_v10, 0.0  ;;  %v446_v12 = vmul.f32 0.15, %v442_v9  ;;  %v447_v13 = vmul.f32 0.15, %v443_v10 }
  0xf4   : > { %v448_v16 = vsel %vm444_vm8, %v442_v9, %v446_v12  ;;  %v449_v17 = vsel %vm445_vm9, %v443_v10, %v447_v13 }
  0xf5   : > { %v454_v18 = vadd.f32 %v609_v14, %v448_v16  ;;  %v455_v19 = vadd.f32 %v610_v15, %v449_v17 }
  0xf7   : > { %v456_v20 = vpack.c.bf16 %v454_v18, %v454_v18  ;;  %v457_v21 = vpack.c.bf16 %v455_v19, %v455_v19 }
  0xf9   : > { %458 = vst.msk [vmem:[%s751_s26] sm:$0xf] %vm411_vm3, %v456_v20 }
  0xfa   : > { %459 = vst.msk [vmem:[%s751_s26 + $0x4] sm:$0xf] %vm411_vm3, %v457_v21 }
  0xfb PF: > { %s14_s17 = sadd.s32 1, %s661_s17   ;;  %s783_s15 = smov %s657_s16 }
  0xfc   : > { %p11_p5 = scmp.ge.s32.totalorder %s14_s17, 4   ;;  %s784_s16 = smov %s786_s18 }
  0xfe   :  { %13 = sbr.rel (!%p11_p5) target bundleno = 2 (0x2), region = 74 }

// kernel: _forward.9
= control target key start
LH: loop header
LB: loop body
LE: loop exit
PB: predicated region body
PF: predicated region fallthrough
CT: control target
= control target key end

     0   :  { %vm24_vm0 = vcmask 1041408   ;;  %vm41_vm1 = vcmask 1041409   ;;  %vm55_vm3 = vcmask 1024   ;;  %s100_s0 = inlined_call_operand.vmem [shape: bf16[2,2,128], index: 0, kind: input, shape index: {}]   ;;  %s101_s1 = inlined_call_operand.vmem [shape: bf16[1,2,128], index: 1, kind: input, shape index: {}]   ;;  %s102_s2 = inlined_call_operand.<no memory space> [shape: f32[1,1], index: 2, kind: input, shape index: {}]   ;;  %s103_s3 = inlined_call_operand.vmem [shape: f32[2,1], index: 3, kind: output, shape index: {}]  }
   0x1   :  { %v16_v0 = vld [vmem:[%s100_s0] sm:$0x1]  ;;  %v17_v1 = vld [vmem:[%s100_s0 + $0x1] sm:$0x1]  ;;  %v8_v3 = vstv %s102_s2 }
   0x2   :  { %v20_v2 = vld [vmem:[%s101_s1] sm:$0x1]  ;;  %v18_v4 = vunpack.c.l.bf16 %v16_v0  ;;  %v19_v5 = vunpack.c.l.bf16 %v17_v1  ;;  %9 = vst [vmem:[#allocation2] sm:$0x1] %v8_v3 }
   0x3   :  { %v21_v6 = vunpack.c.l.bf16 %v20_v2 }
   0x5   :  { %v22_v7 = vmul.f32 %v21_v6, %v18_v4  ;;  %v23_v8 = vmul.f32 %v21_v6, %v19_v5 }
   0x7   :  { %v25_v9 = vsel %vm24_vm0, %v22_v7, 0.0  ;;  %v32_v10 = vsel %vm24_vm0, %v23_v8, 0.0 }
   0x8   :  { %v26_v11 = vrot.slane %v25_v9, 4  ;;  %v33_v12 = vrot.slane %v32_v10, 4 }
   0x9   :  { %v61_v25 = vld [vmem:[#allocation2] ss:$0 sm:$0xff] }
   0xa   :  { %v27_v13 = vadd.f32 %v26_v11, %v25_v9  ;;  %v34_v14 = vadd.f32 %v33_v12, %v32_v10 }
   0xc   :  { %v28_v15 = vrot.slane %v27_v13, 2  ;;  %v35_v16 = vrot.slane %v34_v14, 2 }
   0xe   :  { %v29_v17 = vadd.f32 %v28_v15, %v27_v13  ;;  %v36_v18 = vadd.f32 %v35_v16, %v34_v14 }
  0x10   :  { %v30_v19 = vrot.slane %v29_v17, 1  ;;  %v37_v20 = vrot.slane %v36_v18, 1 }
  0x12   :  { %v31_v21 = vadd.f32 %v30_v19, %v29_v17  ;;  %v38_v22 = vadd.f32 %v37_v20, %v36_v18 }
  0x14   :  { %v42_v23 = vsel %vm41_vm1, %v38_v22, %v31_v21 }
  0x15   :  { %v44_v24 = vsel %vm24_vm0, %v42_v23, 0.0 }
  0x16   :  { %45 = vadd.xlane.f32.xlu0 %v44_v24 }
  0x89   :  { %v46_v26 = vpop.xlane.xlu0 %45 }
  0x8a   :  { %v51_v27 = vadd.f32 %v61_v25, %v46_v26 }
  0x8c   :  { %vm52_vm2 = vcmp.gt.f32.partialorder %v51_v27, 0.0  ;;  %v53_v28 = vmul.f32 0.15, %v51_v27 }
  0x8e   :  { %v54_v29 = vsel %vm52_vm2, %v51_v27, %v53_v28 }
  0x8f   :  { %56 = vst.msk [vmem:[%s103_s3] sm:$0x3] %vm55_vm3, %v54_v29 }

// kernel: _forward.8
= control target key start
LH: loop header
LB: loop body
LE: loop exit
PB: predicated region body
PF: predicated region fallthrough
CT: control target
= control target key end

     0   :  { %s778_s15 = smov 0   ;;  %s780_s16 = smov 0   ;;  %s887_s0 = inlined_call_operand.vmem [shape: bf16[2,4,288], index: 0, kind: input, shape index: {}]   ;;  %s888_s1 = inlined_call_operand.vmem [shape: bf16[288,64], index: 1, kind: input, shape index: {}]   ;;  %s889_s2 = inlined_call_operand.vmem [shape: bf16[32,64], index: 2, kind: input, shape index: {}]   ;;  %s890_s3 = inlined_call_operand.vmem [shape: f32[1,64], index: 3, kind: input, shape index: {}]   ;;  %s891_s4 = inlined_call_operand.vmem [shape: bf16[2,4,64], index: 4, kind: output, shape index: {}]  }
   0x1   :  { %s782_s17 = smov 0  }
   0x2 LB: > { %s26_s18 = sadd.s32 1, %s746_s16  ;;  %p592_p0 = scmp.ge.s32.totalorder %s750_s17, 1  ;;  %s750_s17 = sphi %s782_s17, %s14_s17   ;;  %s746_s16 = sphi %s780_s16, %s893_s16   ;;  %s742_s15 = sphi %s778_s15, %s892_s15  }
   0x3   : > { %p28_p1 = scmp.ge.s32.totalorder %s26_s18, 2  ;;  %p180_p2 = scmp.lt.s32.totalorder %s750_s17, 3 }
   0x5   : > { %s895_s18 = smov (%p28_p1, %s26_s18), 0  ;;  %p181_p3 = pnand %p592_p0, %p180_p2 }
   0x6   : > { %p209_p4 = scmp.lt.s32.totalorder (!%p181_p3), %s742_s15, 1 }
   0x7   : > { %184 = sbr.rel (%p181_p3) target bundleno = 243 (0xf3), region = 36 }
   0xc   : > { %v686_v0 = vld [vmem:[%s888_s1 + $0x38] sm:$0xff]  ;;  %v685_v2 = vld [vmem:[%s888_s1 + $0x30] sm:$0xff]  ;;  %v696_v4 = vld [vmem:[%s888_s1 + $0x88] sm:$0xff]  ;;  %s897_s15 = smov (!%p209_p4, %s742_s15), 1  ;;  %vm381_vm0 = vcmask 261120   ;;  %vm227_vm1 = vcmask 517120  }
   0xd   : > { %v694_v1 = vld [vmem:[%s888_s1 + $0x78] sm:$0xff]  ;;  %384 = vmatpush.bf16.msra.mxu0 %v686_v0  ;;  %v693_v3 = vld [vmem:[%s888_s1 + $0x70] sm:$0xff]  ;;  %416 = vmatpush.bf16.msra.mxu2 %v696_v4  ;;  %v695_v5 = vld [vmem:[%s888_s1 + $0x80] sm:$0xff]  ;;  %s699_s5 = smul.u32 6, %s897_s15  ;;  %v752_v24 = vmov 0.0   ;;  %s594_s19 = sshll.u32 %s897_s15, 1 }
   0xe   : > { %397 = vmatpush.bf16.msra.mxu1 %v694_v1  ;;  %v684_v6 = vld [vmem:[%s888_s1 + $0x28] sm:$0xff]  ;;  %v697_v10 = vld [vmem:[%s889_s2] sm:$0xff]  ;;  %v682_v13 = vld [vmem:[%s888_s1 + $0x18] sm:$0xff]  ;;  %228 = vst.msk [vmem:[#allocation3] sm:$0x3] %vm227_vm1, %v752_v24  ;;  %s870_s24 = scalar_lea.vmem %s891_s4, %s594_s19  ;;  %vm424_vm2 = vcmask 519168  }
   0xf   : > { %v692_v7 = vld [vmem:[%s888_s1 + $0x68] sm:$0xff]  ;;  %s217_s12 = scalar_lea.vmem %s887_s0, %s699_s5  ;;  %v683_v11 = vld [vmem:[%s888_s1 + $0x20] sm:$0xff]  ;;  %v690_v14 = vld [vmem:[%s888_s1 + $0x58] sm:$0xff]  ;;  %vm440_vm3 = vcmask 1040384  }
  0x10   : > { %v698_v8 = vld [vmem:[%s889_s2 + $0x8] sm:$0xff]  ;;  %v229_v9 = vld [vmem:[%s217_s12] sm:$0x3f]  ;;  %v681_v16 = vld [vmem:[%s888_s1 + $0x10] sm:$0xff] }
  0x11   : > { %385 = vmatpush.bf16.msra.mxu0 %v685_v2  ;;  %417 = vmatpush.bf16.msra.mxu2 %v695_v5  ;;  %267 = vst [vmem:[#allocation1] ss:$4 sm:$0xff] %v229_v9  ;;  %v691_v12 = vld [vmem:[%s888_s1 + $0x60] sm:$0xff]  ;;  %v689_v17 = vld [vmem:[%s888_s1 + $0x50] sm:$0xff]  ;;  %v680_v18 = vld [vmem:[%s888_s1 + $0x8] sm:$0xff] }
  0x12   : > { %398 = vmatpush.bf16.msra.mxu1 %v693_v3  ;;  %473 = vmatpush.bf16.msra.mxu3 %v698_v8  ;;  %v688_v19 = vld [vmem:[%s888_s1 + $0x48] sm:$0xff]  ;;  %v679_v20 = vld [vmem:[%s888_s1] sm:$0xff] }
  0x13   : > { %v687_v21 = vld [vmem:[%s888_s1 + $0x40] sm:$0xff] }
  0x14   : > { %v725_v26 = vld [vmem:[%s890_s3] ss:$0 sm:$0xff] }
  0x15   : > { %386 = vmatpush.bf16.msra.mxu0 %v684_v6  ;;  %v423_v53 = vld [vmem:[#allocation3] sm:$0x3] }
  0x16   : > { %399 = vmatpush.bf16.msra.mxu1 %v692_v7  ;;  %474 = vmatpush.bf16.msra.mxu3 %v697_v10 }
  0x18   : > { %v270_v15 = vld.sshfl [vmem:[#allocation1 + $0x10] sm:$0xff pattern:$0x73625140]  ;;  %v268_v22 = vld.sshfl [vmem:[#allocation1] sm:$0xff pattern:$0x73625140] }
  0x19   : > { %387 = vmatpush.bf16.msra.mxu0 %v683_v11  ;;  %676 = vmatmul.msk.bf16.vlgmr.msra.gmra.mxu3 %vm381_vm0, %v229_v9  ;;  %v269_v23 = vld.sshfl [vmem:[#allocation1 + $0x8] sm:$0xff pattern:$0x73625140] }
  0x1a   : > { %400 = vmatpush.bf16.msra.mxu1 %v691_v12  ;;  %667 = vmatmul.msk.bf16.vlgmr.msra.gmra.mxu2 %vm381_vm0, %v270_v15 }
  0x1d   : > { %388 = vmatpush.bf16.msra.mxu0 %v682_v13 }
  0x1e   : > { %401 = vmatpush.bf16.msra.mxu1 %v690_v14 }
  0x21   : > { %389 = vmatpush.bf16.msra.mxu0 %v681_v16 }
  0x22   : > { %402 = vmatpush.bf16.msra.mxu1 %v689_v17 }
  0x25   : > { %390 = vmatpush.bf16.msra.mxu0 %v680_v18 }
  0x26   : > { %403 = vmatpush.bf16.msra.mxu1 %v688_v19 }
  0x29   : > { %391 = vmatpush.bf16.msra.mxu0 %v679_v20 }
  0x2a   : > { %404 = vmatpush.bf16.msra.mxu1 %v687_v21 }
  0x2c   : > { %392 = vmatmul.bf16.vlgmr.msra.gmra.mxu0 %v268_v22 }
  0x2d   : > { %405 = vmatmul.bf16.vlgmr.msra.gmra.mxu1 %v269_v23 }
  0x9c   : > { %v476_v27 = vpop.f32.mrf.mxu3 }
  0x9d   : > { %v419_v25 = vpop.f32.mrf.mxu2  ;;  %v477_v28 = vadd.f32 %v725_v26, %v476_v27 }
  0x9f   : > { %v481_v29 = vpack.c.bf16 %v477_v28, %v477_v28 }
  0xa1   : > { %482 = vst.msk [vmem:[%s870_s24] sm:$0x3] %vm227_vm1, %v481_v29 }
  0xa4   : > { %v478_v31 = vpop.f32.mrf.mxu3 }
  0xa5   : > { %v421_v30 = vpop.f32.mrf.mxu2 }
  0xa8   : > { %v513_v10 = vld [vmem:[%s870_s24] sm:$0x3] }
  0xa9   : > { %v393_v32 = vpop.f32.mrf.mxu0  ;;  %v514_v12 = vunpack.c.l.bf16 %v513_v10 }
  0xaa   : > { %v406_v33 = vpop.f32.mrf.mxu1 }
  0xab   : > { %v407_v34 = vadd.f32 %v406_v33, %v393_v32 }
  0xad   : > { %v420_v35 = vadd.f32 %v419_v25, %v407_v34 }
  0xaf   : > { %v425_v36 = vsel %vm424_vm2, %v420_v35, 0.0  ;;  %v432_v37 = vmul.f32 %v420_v35, %v420_v35  ;;  %480 = vst.msk [vmem:[#allocation2] sm:$0xf] %vm424_vm2, %v420_v35 }
  0xb0   : > { %v426_v38 = vrot.slane %v425_v36, 4 }
  0xb1   : > { %v433_v39 = vsel %vm424_vm2, %v432_v37, 0.0  ;;  %v395_v42 = vpop.f32.mrf.mxu0 }
  0xb2   : > { %v427_v40 = vadd.f32 %v426_v38, %v425_v36  ;;  %v434_v41 = vrot.slane %v433_v39, 4  ;;  %v408_v43 = vpop.f32.mrf.mxu1 }
  0xb4   : > { %v428_v44 = vrot.slane %v427_v40, 2  ;;  %v435_v45 = vadd.f32 %v434_v41, %v433_v39 }
  0xb6   : > { %v429_v46 = vadd.f32 %v428_v44, %v427_v40  ;;  %v436_v47 = vrot.slane %v435_v45, 2  ;;  %v505_v7 = vld [vmem:[#allocation2] sm:$0xf] }
  0xb8   : > { %v430_v48 = vrot.slane %v429_v46, 1  ;;  %v437_v49 = vadd.f32 %v436_v47, %v435_v45 }
  0xba   : > { %v438_v50 = vrot.slane %v437_v49, 1  ;;  %v431_v51 = vadd.f32 %v430_v48, %v429_v46 }
  0xbc   : > { %v439_v52 = vadd.f32 %v438_v50, %v437_v49 }
  0xbe   : > { %v441_v54 = vsel %vm440_vm3, %v431_v51, %v439_v52 }
  0xbf   : > { %v442_v55 = vadd.f32 %v441_v54, %v423_v53 }
  0xc1   : > { %444 = vst.msk [vmem:[#allocation3] sm:$0x3] %vm227_vm1, %v442_v55 }
  0xc8   : > { %v486_v56 = vld [vmem:[#allocation3] sm:$0x3] }
  0xc9   : > { %v487_v57 = vmul.f32 0.25, %v486_v56 }
  0xcb   : > { %v488_v58 = vmul.f32 %v487_v57, %v487_v57  ;;  %v506_v4 = vperm.slane %v487_v57, 0 }
  0xcd   : > { %v490_v59 = vrot.slane %v488_v58, 7  ;;  %v507_v8 = vsub.f32 %v505_v7, %v506_v4 }
  0xcf   : > { %v492_v60 = vsub.f32 %v487_v57, %v490_v59 }
  0xd1   : > { %v493_v61 = vmax.f32 %v492_v60, 0.0 }
  0xd3   : > { %v494_v62 = vadd.f32 1e-05, %v493_v61 }
  0xd5   : > { %726 = vrsqrt.f32 %v494_v62  ;;  %vm501_vm5 = vweird.f32 %v494_v62 }
  0xdb   : > { %v727_v63 = vpop.eup %726 }
  0xdc   : > { %v496_v0 = vmul.f32 %v727_v63, %v494_v62  ;;  %vm502_vm4 = vweird.f32 %v727_v63 }
  0xdd   : > { %vm503_vm6 = vmor %vm501_vm5, %vm502_vm4 }
  0xde   : > { %v497_v1 = vmul.f32 %v727_v63, %v496_v0 }
  0xe0   : > { %v498_v2 = vmul.f32 0.5, %v497_v1 }
  0xe2   : > { %v499_v3 = vsub.f32 1.5, %v498_v2 }
  0xe4   : > { %v500_v5 = vmul.f32 %v727_v63, %v499_v3 }
  0xe6   : > { %v504_v6 = vsel %vm503_vm6, %v727_v63, %v500_v5 }
  0xe7   : > { %v508_v9 = vperm.slane %v504_v6, 1 }
  0xe9   : > { %v509_v11 = vmul.f32 %v508_v9, %v507_v8 }
  0xeb   : > { %vm510_vm7 = vcmp.gt.f32.partialorder %v509_v11, 0.0  ;;  %v511_v13 = vmul.f32 0.15, %v509_v11 }
  0xed   : > { %v512_v14 = vsel %vm510_vm7, %v509_v11, %v511_v13 }
  0xee   : > { %v515_v15 = vadd.f32 %v514_v12, %v512_v14 }
  0xf0   : > { %v516_v16 = vpack.c.bf16 %v515_v15, %v515_v15 }
  0xf2   : > { %517 = vst.msk [vmem:[%s870_s24] sm:$0x3] %vm227_vm1, %v516_v16 }
  0xf3 PF: > { %s14_s17 = sadd.s32 1, %s750_s17   ;;  %s892_s15 = smov %s746_s16 }
  0xf4   : > { %p11_p5 = scmp.ge.s32.totalorder %s14_s17, 4   ;;  %s893_s16 = smov %s895_s18 }
  0xf6   :  { %13 = sbr.rel (!%p11_p5) target bundleno = 2 (0x2), region = 74 }

</bundles_post_ra>
